<compile_context>
chip_gen: v7x
topology: tpu7x:2x2x1
jax: 0.10.0
libtpu: 0.0.40
codegen_flags: <defaults>
</compile_context>

<pallas_src>
import jax
import jax.numpy as jnp
from jax.experimental import pallas as pl
from jax.experimental.pallas import tpu as pltpu

BLOCK_SIZE = 128   # matches PyTorch `block_size`
NUM_EMBD = 192     # matches PyTorch `num_embd`
HEAD_SIZE = 32
DROPOUT = 0.3      # unused (eval mode)


def prepare_head_weights(wk, wq, wv):
    """One-time weight prep: fuse [Wk | Wq | Wv], fold 1/sqrt(H) into Wq, bf16.

    Call this once at init, NOT per forward call (the whole point is hoisting
    the concat + scale out of the hot path).
    """
    h = wq.shape[-1]
    scale = jnp.float32(h) ** jnp.float32(-0.5)
    w_qkv = jnp.concatenate([wk, wq * scale, wv], axis=-1)   # (C, 3H)
    return w_qkv.astype(jnp.bfloat16)


def head_kernel(x_ref, w_qkv_ref, ot_ref):
    # x_ref:     (BB, T, C) block (BB = batch elements handled this grid step)
    # w_qkv_ref: (C, 3H) fused bf16 [Wk | Wq/sqrt(H) | Wv]
    # ot_ref:    (BB, H, T)  -- transposed output so the store is 128-lane dense
    BB, T, C = x_ref.shape
    H = ot_ref.shape[1]

    w_qkv = w_qkv_ref[...]                                       # (C, 3H) bf16

    # Single fused QKV projection for the whole block: (BB*T, C) x (C, 3H).
    # bf16 operands feed the MXU at its bf16 rate; accumulate in f32.
    x = x_ref[...].reshape(BB * T, C).astype(jnp.bfloat16)
    qkv = jnp.dot(x, w_qkv, preferred_element_type=jnp.float32)  # (BB*T, 3H) f32

    # Causal (lower-triangular) mask, built once per grid step.
    row = jax.lax.broadcasted_iota(jnp.int32, (T, T), 0)
    col = jax.lax.broadcasted_iota(jnp.int32, (T, T), 1)
    causal = col <= row

    for b in range(BB):                                          # static unroll
        kqv = qkv[b * T:(b + 1) * T]                             # (T, 3H) f32
        k = kqv[:, 0 * H:1 * H]                                  # (T, H)
        q = kqv[:, 1 * H:2 * H]                                  # (T, H) (pre-scaled)
        v = kqv[:, 2 * H:3 * H]                                  # (T, H)

        # scores = q @ k.T without materializing k.T: contract both on H.
        scores = jax.lax.dot_general(
            q.astype(jnp.bfloat16), k.astype(jnp.bfloat16),
            dimension_numbers=(((1,), (1,)), ((), ())),
            preferred_element_type=jnp.float32)                  # (T, T) f32

        # Finite sentinel instead of -inf: exp underflows to exactly 0 after
        # max-subtraction (every row has at least the diagonal unmasked).
        scores = jnp.where(causal, scores, jnp.float32(-1e30))

        # Softmax along the last axis in f32 (exp on EUP, approx vrcp on EUP).
        scores = scores - jnp.max(scores, axis=-1, keepdims=True)
        p = jnp.exp(scores)
        p = p * pl.reciprocal(jnp.sum(p, axis=-1, keepdims=True), approx=True)

        # (dropout would go here; identity in eval mode)

        # out^T[h, t] = sum_s v[s, h] * p[t, s] -> (H, T): same contraction as
        # p @ v but oriented so the store below is full-128-lane (T last).
        out_t = jax.lax.dot_general(
            v.astype(jnp.bfloat16), p.astype(jnp.bfloat16),
            dimension_numbers=(((0,), (1,)), ((), ())),
            preferred_element_type=jnp.float32)                  # (H, T)

        ot_ref[b] = out_t.astype(ot_ref.dtype)


def _batch_per_block(batch):
    """Batch elements per grid step: 1 on 2-TC chips (v7x) so the 'parallel'
    grid axis spreads across both TensorCores; the full batch on single-TC
    chips (v5e/v6e) to avoid duplicated per-step overhead and mask compute."""
    try:
        kind = jax.devices()[0].device_kind.lower()
    except Exception:
        kind = ""
    two_tensorcores = ("v7" in kind) or ("7x" in kind) or ("tpu7" in kind)
    return 1 if two_tensorcores else batch


@jax.jit
def head_forward(x, w_qkv):
    B, T, C = x.shape
    H = w_qkv.shape[-1] // 3
    bb = _batch_per_block(B)
    if B % bb != 0:
        bb = 1
    out_t = pl.pallas_call(
        head_kernel,
        out_shape=jax.ShapeDtypeStruct((B, H, T), x.dtype),
        grid=(B // bb,),
        in_specs=[
            pl.BlockSpec((bb, T, C), lambda b: (b, 0, 0)),
            pl.BlockSpec((C, 3 * H), lambda b: (0, 0)),
        ],
        out_specs=pl.BlockSpec((bb, H, T), lambda b: (b, 0, 0)),
        compiler_params=pltpu.CompilerParams(
            dimension_semantics=("parallel",)),
    )(x, w_qkv)
    # One small wrapper transpose back to the module's (B, T, H) layout; all
    # in-kernel stores were lane-dense (last dim T=128).
    return jnp.transpose(out_t, (0, 2, 1))


def head_reference(x, wk, wq, wv):
    k = x @ wk
    q = x @ wq
    v = x @ wv
    scale = k.shape[-1] ** -0.5
    w = jnp.einsum("btd,bsd->bts", q, k) * scale
    T = x.shape[1]
    tril = jnp.tril(jnp.ones((T, T), dtype=bool))
    w = jnp.where(tril, w, -jnp.inf)
    w = jax.nn.softmax(w, axis=-1)
    return w @ v


if __name__ == "__main__":
    key = jax.random.PRNGKey(0)
    kx, kk, kq, kv = jax.random.split(key, 4)

    B, T, C, H = 2, BLOCK_SIZE, NUM_EMBD, HEAD_SIZE
    x = jax.random.normal(kx, (B, T, C), dtype=jnp.float32)

    # Deterministic init matching nn.Linear(num_embd, head_size, bias=False)
    # shapes, stored transposed so the kernel computes x @ W.
    bound = 1.0 / (C ** 0.5)
    wk = jax.random.uniform(kk, (C, H), jnp.float32, -bound, bound)
    wq = jax.random.uniform(kq, (C, H), jnp.float32, -bound, bound)
    wv = jax.random.uniform(kv, (C, H), jnp.float32, -bound, bound)

    # One-time weight prep (fuse + fold 1/sqrt(H) + bf16), hoisted out of the
    # per-call path.
    w_qkv = jax.block_until_ready(prepare_head_weights(wk, wq, wv))

    out = jax.block_until_ready(head_forward(x, w_qkv))

    ref = head_reference(x, wk, wq, wv)
    assert out.shape == (B, T, H), out.shape
    # Tolerance accounts for bf16 MXU operands + approx=True reciprocal.
    max_err = float(jnp.max(jnp.abs(out - ref)))
    assert jnp.allclose(out, ref, atol=2e-2, rtol=2e-2), max_err

    print("KERNEL_OK")
</pallas_src>

<mosaic_0001>
module attributes {stable_mosaic.version = 11 : i64} {
  func.func @head_kernel(%arg0: i32, %arg1: memref<2x128x192xf32, #tpu.memory_space<vmem>>, %arg2: memref<192x96xbf16, #tpu.memory_space<vmem>>, %arg3: memref<2x32x128xf32, #tpu.memory_space<vmem>>) attributes {dimension_semantics = [#tpu.dimension_semantics<parallel>], iteration_bounds = array<i64: 1>, scalar_prefetch = 0 : i64, scratch_operands = 0 : i64, tpu.core_type = #tpu.core_type<tc>, window_params = [{transform_indices = @transform_0, window_bounds = array<i64: 2, 128, 192>}, {pipeline_mode = #tpu.pipeline_mode<synchronous>, transform_indices = @transform_1, window_bounds = array<i64: 192, 96>}, {transform_indices = @transform_2, window_bounds = array<i64: 2, 32, 128>}]} {
    %c0 = arith.constant 0 : index
    %c0_0 = arith.constant 0 : index
    %0 = vector.load %arg2[%c0, %c0_0] : memref<192x96xbf16, #tpu.memory_space<vmem>>, vector<192x96xbf16>
    %c0_1 = arith.constant 0 : index
    %c0_2 = arith.constant 0 : index
    %c0_3 = arith.constant 0 : index
    %1 = vector.load %arg1[%c0_1, %c0_2, %c0_3] : memref<2x128x192xf32, #tpu.memory_space<vmem>>, vector<2x128x192xf32>
    %2 = vector.shape_cast %1 : vector<2x128x192xf32> to vector<256x192xf32>
    %3 = arith.truncf %2 : vector<256x192xf32> to vector<256x192xbf16>
    %cst = arith.constant dense<0.000000e+00> : vector<256x96xf32>
    %4 = tpu.matmul %3, %0, %cst {dimension_numbers = #tpu.dot_dimension_numbers<[1], [0], [0], [1], [0, 0, 1, 1], [], []>} : vector<256x192xbf16>, vector<192x96xbf16>, vector<256x96xf32> -> vector<256x96xf32>
    %5 = tpu.iota {dimensions = array<i32: 0>} : vector<128x128xi32>
    %6 = tpu.iota {dimensions = array<i32: 1>} : vector<128x128xi32>
    %7 = arith.cmpi sle, %6, %5 : vector<128x128xi32>
    %8 = vector.extract_strided_slice %4 {offsets = [0, 0], sizes = [128, 96], strides = [1, 1]} : vector<256x96xf32> to vector<128x96xf32>
    %9 = vector.extract_strided_slice %8 {offsets = [0, 0], sizes = [128, 32], strides = [1, 1]} : vector<128x96xf32> to vector<128x32xf32>
    %10 = vector.extract_strided_slice %8 {offsets = [0, 32], sizes = [128, 32], strides = [1, 1]} : vector<128x96xf32> to vector<128x32xf32>
    %11 = vector.extract_strided_slice %8 {offsets = [0, 64], sizes = [128, 32], strides = [1, 1]} : vector<128x96xf32> to vector<128x32xf32>
    %12 = arith.truncf %10 : vector<128x32xf32> to vector<128x32xbf16>
    %13 = arith.truncf %9 : vector<128x32xf32> to vector<128x32xbf16>
    %cst_4 = arith.constant dense<0.000000e+00> : vector<128x128xf32>
    %14 = tpu.matmul %12, %13, %cst_4 {dimension_numbers = #tpu.dot_dimension_numbers<[1], [1], [0], [0], [0, 0, 1, 0], [], []>} : vector<128x32xbf16>, vector<128x32xbf16>, vector<128x128xf32> -> vector<128x128xf32>
    %cst_5 = arith.constant -1.000000e+30 : f32
    %15 = vector.broadcast %cst_5 : f32 to vector<128x128xf32>
    %16 = arith.select %7, %14, %15 : vector<128x128xi1>, vector<128x128xf32>
    %cst_6 = arith.constant dense<0xFF800000> : vector<128xf32>
    %17 = vector.multi_reduction <maximumf>, %16, %cst_6 [1] : vector<128x128xf32> to vector<128xf32>
    %18 = vector.shape_cast %17 : vector<128xf32> to vector<128x1xf32>
    %19 = vector.broadcast %18 : vector<128x1xf32> to vector<128x128xf32>
    %20 = arith.subf %16, %19 : vector<128x128xf32>
    %21 = math.exp %20 : vector<128x128xf32>
    %cst_7 = arith.constant dense<0.000000e+00> : vector<128xf32>
    %22 = vector.multi_reduction <add>, %21, %cst_7 [1] : vector<128x128xf32> to vector<128xf32>
    %23 = vector.shape_cast %22 : vector<128xf32> to vector<128x1xf32>
    %24 = tpu.reciprocal %23 {approx = true} : vector<128x1xf32> -> vector<128x1xf32>
    %25 = vector.broadcast %24 : vector<128x1xf32> to vector<128x128xf32>
    %26 = arith.mulf %21, %25 : vector<128x128xf32>
    %27 = arith.truncf %11 : vector<128x32xf32> to vector<128x32xbf16>
    %28 = arith.truncf %26 : vector<128x128xf32> to vector<128x128xbf16>
    %cst_8 = arith.constant dense<0.000000e+00> : vector<32x128xf32>
    %29 = tpu.matmul %27, %28, %cst_8 {dimension_numbers = #tpu.dot_dimension_numbers<[0], [1], [1], [0], [0, 1, 1, 0], [], []>} : vector<128x32xbf16>, vector<128x128xbf16>, vector<32x128xf32> -> vector<32x128xf32>
    %c0_9 = arith.constant 0 : index
    %c0_10 = arith.constant 0 : index
    %c0_11 = arith.constant 0 : index
    %30 = vector.load %arg3[%c0_9, %c0_10, %c0_11] : memref<2x32x128xf32, #tpu.memory_space<vmem>>, vector<1x32x128xf32>
    %31 = vector.shape_cast %30 : vector<1x32x128xf32> to vector<32x128xf32>
    %32 = vector.shape_cast %29 : vector<32x128xf32> to vector<1x32x128xf32>
    tpu.vector_store %arg3[%c0_9, %c0_10, %c0_11], %32 {strides = array<i32>} : memref<2x32x128xf32, #tpu.memory_space<vmem>>, vector<1x32x128xf32>,
    %33 = vector.extract_strided_slice %4 {offsets = [128, 0], sizes = [128, 96], strides = [1, 1]} : vector<256x96xf32> to vector<128x96xf32>
    %34 = vector.extract_strided_slice %33 {offsets = [0, 0], sizes = [128, 32], strides = [1, 1]} : vector<128x96xf32> to vector<128x32xf32>
    %35 = vector.extract_strided_slice %33 {offsets = [0, 32], sizes = [128, 32], strides = [1, 1]} : vector<128x96xf32> to vector<128x32xf32>
    %36 = vector.extract_strided_slice %33 {offsets = [0, 64], sizes = [128, 32], strides = [1, 1]} : vector<128x96xf32> to vector<128x32xf32>
    %37 = arith.truncf %35 : vector<128x32xf32> to vector<128x32xbf16>
    %38 = arith.truncf %34 : vector<128x32xf32> to vector<128x32xbf16>
    %cst_12 = arith.constant dense<0.000000e+00> : vector<128x128xf32>
    %39 = tpu.matmul %37, %38, %cst_12 {dimension_numbers = #tpu.dot_dimension_numbers<[1], [1], [0], [0], [0, 0, 1, 0], [], []>} : vector<128x32xbf16>, vector<128x32xbf16>, vector<128x128xf32> -> vector<128x128xf32>
    %cst_13 = arith.constant -1.000000e+30 : f32
    %40 = vector.broadcast %cst_13 : f32 to vector<128x128xf32>
    %41 = arith.select %7, %39, %40 : vector<128x128xi1>, vector<128x128xf32>
    %cst_14 = arith.constant dense<0xFF800000> : vector<128xf32>
    %42 = vector.multi_reduction <maximumf>, %41, %cst_14 [1] : vector<128x128xf32> to vector<128xf32>
    %43 = vector.shape_cast %42 : vector<128xf32> to vector<128x1xf32>
    %44 = vector.broadcast %43 : vector<128x1xf32> to vector<128x128xf32>
    %45 = arith.subf %41, %44 : vector<128x128xf32>
    %46 = math.exp %45 : vector<128x128xf32>
    %cst_15 = arith.constant dense<0.000000e+00> : vector<128xf32>
    %47 = vector.multi_reduction <add>, %46, %cst_15 [1] : vector<128x128xf32> to vector<128xf32>
    %48 = vector.shape_cast %47 : vector<128xf32> to vector<128x1xf32>
    %49 = tpu.reciprocal %48 {approx = true} : vector<128x1xf32> -> vector<128x1xf32>
    %50 = vector.broadcast %49 : vector<128x1xf32> to vector<128x128xf32>
    %51 = arith.mulf %46, %50 : vector<128x128xf32>
    %52 = arith.truncf %36 : vector<128x32xf32> to vector<128x32xbf16>
    %53 = arith.truncf %51 : vector<128x128xf32> to vector<128x128xbf16>
    %cst_16 = arith.constant dense<0.000000e+00> : vector<32x128xf32>
    %54 = tpu.matmul %52, %53, %cst_16 {dimension_numbers = #tpu.dot_dimension_numbers<[0], [1], [1], [0], [0, 1, 1, 0], [], []>} : vector<128x32xbf16>, vector<128x128xbf16>, vector<32x128xf32> -> vector<32x128xf32>
    %c1 = arith.constant 1 : index
    %c0_17 = arith.constant 0 : index
    %c0_18 = arith.constant 0 : index
    %55 = vector.load %arg3[%c1, %c0_17, %c0_18] : memref<2x32x128xf32, #tpu.memory_space<vmem>>, vector<1x32x128xf32>
    %56 = vector.shape_cast %55 : vector<1x32x128xf32> to vector<32x128xf32>
    %57 = vector.shape_cast %54 : vector<32x128xf32> to vector<1x32x128xf32>
    tpu.vector_store %arg3[%c1, %c0_17, %c0_18], %57 {strides = array<i32>} : memref<2x32x128xf32, #tpu.memory_space<vmem>>, vector<1x32x128xf32>,
    return
  }
  func.func @transform_0(%arg0: i32) -> (i32, i32, i32) {
    %c0_i32 = arith.constant 0 : i32
    %c0_i32_0 = arith.constant 0 : i32
    %c0_i32_1 = arith.constant 0 : i32
    return %arg0, %c0_i32, %c0_i32_0 : i32, i32, i32
  }
  func.func @transform_1(%arg0: i32) -> (i32, i32) {
    %c0_i32 = arith.constant 0 : i32
    %c0_i32_0 = arith.constant 0 : i32
    %c0_i32_1 = arith.constant 0 : i32
    return %c0_i32, %c0_i32_0 : i32, i32
  }
  func.func @transform_2(%arg0: i32) -> (i32, i32, i32) {
    %c0_i32 = arith.constant 0 : i32
    %c0_i32_0 = arith.constant 0 : i32
    %c0_i32_1 = arith.constant 0 : i32
    return %arg0, %c0_i32, %c0_i32_0 : i32, i32, i32
  }
}

</mosaic_0001>

<bundles_post_ra>
// kernel: head_forward.1
= control target key start
LH: loop header
LB: loop body
LE: loop exit
PB: predicated region body
PF: predicated region fallthrough
CT: control target
= control target key end

     0   :  { %v1730_v1 = vmov 0   ;;  %vm205_vm0 = vcmask 523264   ;;  %s2607_s0 = inlined_call_operand.vmem [shape: f32[2,128,192], index: 0, kind: input, shape index: {}]   ;;  %s2608_s1 = inlined_call_operand.vmem [shape: bf16[192,96], index: 1, kind: input, shape index: {}]   ;;  %s2609_s2 = inlined_call_operand.hbm [shape: f32[2,32,128], index: 2, kind: output, shape index: {}]  }
   0x1   :  { %v1566_v0 = vld [vmem:[%s2608_s1] sm:$0xff]   ;;  %254 = vmatprep.subr.bf16.mxu0 %v1730_v1  ;;  %v1567_v2 = vld [vmem:[%s2608_s1 + $0x8] sm:$0xff]   ;;  %v1568_v3 = vld [vmem:[%s2608_s1 + $0x10] sm:$0xff]  }
   0x2   :  { %255 = vmatpush1.bf16.msra.mxu0 %v1566_v0  ;;  %v1569_v4 = vld [vmem:[%s2608_s1 + $0x18] sm:$0xff]   ;;  %v38_v5 = vld [vmem:[%s2607_s0 + $0x8] sm:$0xff]  ;;  %v1570_v8 = vld [vmem:[%s2608_s1 + $0x20] sm:$0xff]  }
   0x3   :  { %256 = vmatprep.subr.bf16.mxu0 %v1730_v1  ;;  %v40_v6 = vld [vmem:[%s2607_s0 + $0x18] sm:$0xff]  ;;  %v1571_v9 = vld [vmem:[%s2608_s1 + $0x28] sm:$0xff]   ;;  %v1572_v10 = vld [vmem:[%s2608_s1 + $0x30] sm:$0xff]  }
   0x4   :  { %v102_v7 = vpack.c.bf16 %v40_v6, %v38_v5  ;;  %v1573_v11 = vld [vmem:[%s2608_s1 + $0x38] sm:$0xff]   ;;  %v1574_v12 = vld [vmem:[%s2608_s1 + $0x40] sm:$0xff]  }
   0x6   :  { %257 = vmatpush1.bf16.msra.mxu0 %v1567_v2  ;;  %1356 = vmatprep.mubr.msk.bf16.mxu0 %vm205_vm0, %v102_v7 }
   0x7   :  { %258 = vmatprep.subr.bf16.mxu0 %v1730_v1 }
   0xa   :  { %259 = vmatpush1.bf16.msra.mxu0 %v1568_v3 }
   0xb   :  { %260 = vmatprep.subr.bf16.mxu0 %v1730_v1 }
   0xe   :  { %261 = vmatpush1.bf16.msra.mxu0 %v1569_v4 }
   0xf   :  { %262 = vmatprep.subr.bf16.mxu0 %v1730_v1 }
  0x12   :  { %263 = vmatpush1.bf16.msra.mxu0 %v1570_v8 }
  0x13   :  { %264 = vmatprep.subr.bf16.mxu0 %v1730_v1 }
  0x16   :  { %265 = vmatpush1.bf16.msra.mxu0 %v1571_v9 }
  0x17   :  { %266 = vmatprep.subr.bf16.mxu0 %v1730_v1 }
  0x1a   :  { %267 = vmatpush1.bf16.msra.mxu0 %v1572_v10 }
  0x1b   :  { %268 = vmatprep.subr.bf16.mxu0 %v1730_v1 }
  0x1e   :  { %269 = vmatpush1.bf16.msra.mxu0 %v1573_v11 }
  0x1f   :  { %270 = vmatprep.subr.bf16.mxu0 %v1730_v1 }
  0x20   :  { %7 = vsyncpa [#allocation3], 0  ;;  %v1575_v13 = vld [vmem:[%s2608_s1 + $0x48] sm:$0xff]   ;;  %v1576_v14 = vld [vmem:[%s2608_s1 + $0x50] sm:$0xff]   ;;  %vm482_vm1 = vcmask 261120   ;;  %s1733_s17 = smov [#allocation2]  }
  0x21   :  { %v1577_v15 = vld [vmem:[%s2608_s1 + $0x58] sm:$0xff]   ;;  %v37_v16 = vld [vmem:[%s2607_s0] sm:$0xff]  ;;  %v39_v17 = vld [vmem:[%s2607_s0 + $0x10] sm:$0xff]  ;;  %s1731_s1 = smov 96   ;;  %s1333_s18 = sshll.u32 %s1733_s17, 4  ;;  %s1334_s18 = int_to_ptr.vmem [resolvable:$true] %s1333_s18 }
  0x22   :  { %271 = vmatpush1.bf16.msra.mxu0 %v1574_v12  ;;  %v42_v18 = vld [vmem:[%s2607_s0 + $0x28] sm:$0xff]  ;;  %v44_v19 = vld [vmem:[%s2607_s0 + $0x38] sm:$0xff]  ;;  %v101_v20 = vpack.c.bf16 %v39_v17, %v37_v16  ;;  %v41_v22 = vld [vmem:[%s2607_s0 + $0x20] sm:$0xff]  ;;  %s1706_s19 = scalar_lea.vmem %s1334_s18, 1024  ;;  %p1711_p1 = scmp.lt.s32.totalorder %s1334_s18, %s1334_s18 }
  0x23   :  { %272 = vmatprep.subr.bf16.mxu0 %v1730_v1  ;;  %v104_v21 = vpack.c.bf16 %v44_v19, %v42_v18  ;;  %v43_v23 = vld [vmem:[%s2607_s0 + $0x30] sm:$0xff]  ;;  %v46_v24 = vld [vmem:[%s2607_s0 + $0x48] sm:$0xff]  ;;  %v48_v25 = vld [vmem:[%s2607_s0 + $0x58] sm:$0xff]  ;;  %p1707_p0 = scmp.ne.s32.totalorder %s1334_s18, %s1706_s19  ;;  %p1712_p2 = scmp.lt.s32.totalorder %s1706_s19, %s1706_s19 }
  0x24   :  { %v103_v26 = vpack.c.bf16 %v43_v23, %v41_v22  ;;  %v106_v27 = vpack.c.bf16 %v48_v25, %v46_v24  ;;  %v45_v28 = vld [vmem:[%s2607_s0 + $0x40] sm:$0xff]  ;;  %v47_v29 = vld [vmem:[%s2607_s0 + $0x50] sm:$0xff]  ;;  %v50_v30 = vld [vmem:[%s2607_s0 + $0x68] sm:$0xff] }
  0x25   :  { %v52_v31 = vld [vmem:[%s2607_s0 + $0x78] sm:$0xff]  ;;  %v105_v32 = vpack.c.bf16 %v47_v29, %v45_v28  ;;  %v49_v34 = vld [vmem:[%s2607_s0 + $0x60] sm:$0xff]  ;;  %v51_v35 = vld [vmem:[%s2607_s0 + $0x70] sm:$0xff]  ;;  %p1713_p3 = por %p1712_p2, %p1711_p1 }
  0x26   :  { %273 = vmatpush1.bf16.msra.mxu0 %v1575_v13  ;;  %v108_v33 = vpack.c.bf16 %v52_v31, %v50_v30  ;;  %v54_v36 = vld [vmem:[%s2607_s0 + $0x88] sm:$0xff]  ;;  %v56_v37 = vld [vmem:[%s2607_s0 + $0x98] sm:$0xff]  ;;  %v107_v38 = vpack.c.bf16 %v51_v35, %v49_v34  ;;  %v53_v40 = vld [vmem:[%s2607_s0 + $0x80] sm:$0xff] }
  0x27   :  { %274 = vmatprep.subr.bf16.mxu0 %v1730_v1  ;;  %v110_v39 = vpack.c.bf16 %v56_v37, %v54_v36  ;;  %v55_v41 = vld [vmem:[%s2607_s0 + $0x90] sm:$0xff]  ;;  %v58_v42 = vld [vmem:[%s2607_s0 + $0xa8] sm:$0xff]  ;;  %v60_v43 = vld [vmem:[%s2607_s0 + $0xb8] sm:$0xff]  ;;  %p1714_p4 = pnand %p1713_p3, %p1707_p0 }
  0x28   :  { %v109_v44 = vpack.c.bf16 %v55_v41, %v53_v40  ;;  %v112_v45 = vpack.c.bf16 %v60_v43, %v58_v42  ;;  %v57_v46 = vld [vmem:[%s2607_s0 + $0xa0] sm:$0xff]  ;;  %v59_v47 = vld [vmem:[%s2607_s0 + $0xb0] sm:$0xff]  ;;  %v62_v48 = vld [vmem:[%s2607_s0 + $0xc8] sm:$0xff] }
  0x29   :  { %v64_v49 = vld [vmem:[%s2607_s0 + $0xd8] sm:$0xff]  ;;  %v111_v50 = vpack.c.bf16 %v59_v47, %v57_v46  ;;  %v61_v52 = vld [vmem:[%s2607_s0 + $0xc0] sm:$0xff]  ;;  %v63_v53 = vld [vmem:[%s2607_s0 + $0xd0] sm:$0xff] }
  0x2a   :  { %275 = vmatpush1.bf16.msra.mxu0 %v1576_v14  ;;  %v114_v51 = vpack.c.bf16 %v64_v49, %v62_v48  ;;  %v66_v54 = vld [vmem:[%s2607_s0 + $0xe8] sm:$0xff]  ;;  %v68_v55 = vld [vmem:[%s2607_s0 + $0xf8] sm:$0xff]  ;;  %v113_v56 = vpack.c.bf16 %v63_v53, %v61_v52  ;;  %v65_v58 = vld [vmem:[%s2607_s0 + $0xe0] sm:$0xff] }
  0x2b   :  { %276 = vmatprep.subr.bf16.mxu0 %v1730_v1  ;;  %v116_v57 = vpack.c.bf16 %v68_v55, %v66_v54  ;;  %v67_v59 = vld [vmem:[%s2607_s0 + $0xf0] sm:$0xff]  ;;  %v70_v60 = vld [vmem:[%s2607_s0 + $0x108] sm:$0xff]  ;;  %v72_v61 = vld [vmem:[%s2607_s0 + $0x118] sm:$0xff] }
  0x2c   :  { %v115_v62 = vpack.c.bf16 %v67_v59, %v65_v58  ;;  %v118_v63 = vpack.c.bf16 %v72_v61, %v70_v60  ;;  %v69_v0 = vld [vmem:[%s2607_s0 + $0x100] sm:$0xff]  ;;  %v71_v1 = vld [vmem:[%s2607_s0 + $0x110] sm:$0xff]  ;;  %v74_v2 = vld [vmem:[%s2607_s0 + $0x128] sm:$0xff] }
  0x2d   :  { %v76_v3 = vld [vmem:[%s2607_s0 + $0x138] sm:$0xff]  ;;  %v117_v4 = vpack.c.bf16 %v71_v1, %v69_v0  ;;  %v73_v6 = vld [vmem:[%s2607_s0 + $0x120] sm:$0xff]  ;;  %v75_v7 = vld [vmem:[%s2607_s0 + $0x130] sm:$0xff] }
  0x2e   :  { %277 = vmatpush1.bf16.msra.mxu0 %v1577_v15  ;;  %v120_v5 = vpack.c.bf16 %v76_v3, %v74_v2  ;;  %v78_v8 = vld [vmem:[%s2607_s0 + $0x148] sm:$0xff]  ;;  %v80_v9 = vld [vmem:[%s2607_s0 + $0x158] sm:$0xff]  ;;  %v119_v10 = vpack.c.bf16 %v75_v7, %v73_v6  ;;  %v77_v12 = vld [vmem:[%s2607_s0 + $0x140] sm:$0xff] }
  0x2f   :  { %v122_v11 = vpack.c.bf16 %v80_v9, %v78_v8  ;;  %v79_v13 = vld [vmem:[%s2607_s0 + $0x150] sm:$0xff]  ;;  %v82_v14 = vld [vmem:[%s2607_s0 + $0x168] sm:$0xff]  ;;  %v84_v15 = vld [vmem:[%s2607_s0 + $0x178] sm:$0xff] }
  0x30   :  { %v121_v16 = vpack.c.bf16 %v79_v13, %v77_v12  ;;  %v124_v17 = vpack.c.bf16 %v84_v15, %v82_v14  ;;  %v81_v18 = vld [vmem:[%s2607_s0 + $0x160] sm:$0xff]  ;;  %v83_v19 = vld [vmem:[%s2607_s0 + $0x170] sm:$0xff] }
  0x31   :  { %287 = vmatmul.mubr.bf16.vlgmr.msra.gmra.mrb[0].mxu0 %v101_v20  ;;  %v86_v20 = vld [vmem:[%s2607_s0 + $0x188] sm:$0xff]  ;;  %v123_v22 = vpack.c.bf16 %v83_v19, %v81_v18  ;;  %v85_v24 = vld [vmem:[%s2607_s0 + $0x180] sm:$0xff]  ;;  %v87_v25 = vld [vmem:[%s2607_s0 + $0x190] sm:$0xff] }
  0x32   :  { %1357 = vmatprep.mubr.msk.bf16.mxu0 %vm205_vm0, %v104_v21  ;;  %v88_v21 = vld [vmem:[%s2607_s0 + $0x198] sm:$0xff]  ;;  %v125_v28 = vpack.c.bf16 %v87_v25, %v85_v24  ;;  %v89_v30 = vld [vmem:[%s2607_s0 + $0x1a0] sm:$0xff]  ;;  %v91_v31 = vld [vmem:[%s2607_s0 + $0x1b0] sm:$0xff] }
  0x33   :  { %v126_v23 = vpack.c.bf16 %v88_v21, %v86_v20  ;;  %v127_v34 = vpack.c.bf16 %v91_v31, %v89_v30  ;;  %v93_v36 = vld [vmem:[%s2607_s0 + $0x1c0] sm:$0xff]  ;;  %v95_v37 = vld [vmem:[%s2607_s0 + $0x1d0] sm:$0xff] }
  0x34   :  { %v129_v40 = vpack.c.bf16 %v95_v37, %v93_v36  ;;  %v97_v42 = vld [vmem:[%s2607_s0 + $0x1e0] sm:$0xff]  ;;  %v99_v43 = vld [vmem:[%s2607_s0 + $0x1f0] sm:$0xff] }
  0x39   :  { %295 = vmatmul.mubr.bf16.gmra.mrb[4].mxu0 %v103_v26  ;;  %v90_v26 = vld [vmem:[%s2607_s0 + $0x1a8] sm:$0xff] }
  0x3a   :  { %1358 = vmatprep.mubr.msk.bf16.mxu0 %vm205_vm0, %v106_v27  ;;  %v92_v27 = vld [vmem:[%s2607_s0 + $0x1b8] sm:$0xff] }
  0x3b   :  { %v128_v29 = vpack.c.bf16 %v92_v27, %v90_v26 }
  0x41   :  { %303 = vmatmul.mubr.bf16.gmra.mrb[8].mxu0 %v105_v32  ;;  %v94_v32 = vld [vmem:[%s2607_s0 + $0x1c8] sm:$0xff] }
  0x42   :  { %1359 = vmatprep.mubr.msk.bf16.mxu0 %vm205_vm0, %v108_v33  ;;  %v96_v33 = vld [vmem:[%s2607_s0 + $0x1d8] sm:$0xff] }
  0x43   :  { %v130_v35 = vpack.c.bf16 %v96_v33, %v94_v32 }
  0x49   :  { %311 = vmatmul.mubr.bf16.gmra.mrb[12].mxu0 %v107_v38  ;;  %v98_v38 = vld [vmem:[%s2607_s0 + $0x1e8] sm:$0xff] }
  0x4a   :  { %1360 = vmatprep.mubr.msk.bf16.mxu0 %vm205_vm0, %v110_v39  ;;  %v100_v39 = vld [vmem:[%s2607_s0 + $0x1f8] sm:$0xff]  ;;  %s1732_s0 = smov 64  }
  0x4b   :  { %v132_v41 = vpack.c.bf16 %v100_v39, %v98_v38 }
  0x51   :  { %319 = vmatmul.mubr.bf16.gmra.mrb[16].mxu0 %v109_v44  ;;  %v131_v44 = vpack.c.bf16 %v99_v43, %v97_v42 }
  0x52   :  { %1361 = vmatprep.mubr.msk.bf16.mxu0 %vm205_vm0, %v112_v45 }
  0x59   :  { %327 = vmatmul.mubr.bf16.gmra.mrb[20].mxu0 %v111_v50 }
  0x5a   :  { %1362 = vmatprep.mubr.msk.bf16.mxu0 %vm205_vm0, %v114_v51 }
  0x61   :  { %335 = vmatmul.mubr.bf16.gmra.mrb[24].mxu0 %v113_v56 }
  0x62   :  { %1363 = vmatprep.mubr.msk.bf16.mxu0 %vm205_vm0, %v116_v57 }
  0x69   :  { %343 = vmatmul.mubr.bf16.gmra.mrb[28].mxu0 %v115_v62 }
  0x6a   :  { %1364 = vmatprep.mubr.msk.bf16.mxu0 %vm205_vm0, %v118_v63 }
  0x71   :  { %351 = vmatmul.mubr.bf16.gmra.mrb[32].mxu0 %v117_v4 }
  0x72   :  { %1365 = vmatprep.mubr.msk.bf16.mxu0 %vm205_vm0, %v120_v5 }
  0x79   :  { %359 = vmatmul.mubr.bf16.gmra.mrb[36].mxu0 %v119_v10 }
  0x7a   :  { %1366 = vmatprep.mubr.msk.bf16.mxu0 %vm205_vm0, %v122_v11 }
  0x81   :  { %367 = vmatmul.mubr.bf16.gmra.mrb[40].mxu0 %v121_v16 }
  0x82   :  { %1367 = vmatprep.mubr.msk.bf16.mxu0 %vm205_vm0, %v124_v17 }
  0x89   :  { %375 = vmatmul.mubr.bf16.gmra.mrb[44].mxu0 %v123_v22 }
  0x8a   :  { %1368 = vmatprep.mubr.msk.bf16.mxu0 %vm205_vm0, %v126_v23 }
  0x91   :  { %383 = vmatmul.mubr.bf16.gmra.mrb[48].mxu0 %v125_v28 }
  0x92   :  { %1369 = vmatprep.mubr.msk.bf16.mxu0 %vm205_vm0, %v128_v29 }
  0x99   :  { %391 = vmatmul.mubr.bf16.gmra.mrb[52].mxu0 %v127_v34 }
  0x9a   :  { %1370 = vmatprep.mubr.msk.bf16.mxu0 %vm205_vm0, %v130_v35 }
  0xa1   :  { %399 = vmatmul.mubr.bf16.gmra.mrb[56].mxu0 %v129_v40 }
  0xa2   :  { %1371 = vmatprep.mubr.msk.bf16.mxu0 %vm205_vm0, %v132_v41 }
  0xa9   :  { %407 = vmatmul.mubr.bf16.gmra.mrb[60].mxu0 %v131_v44 }
 0x104   :  { %v288_v45 = vpop.f32.mrb[0].mxu0 }
 0x105   :  { %v290_v46 = vpop.f32.mrb[1].mxu0 }
 0x106   :  { %v291_v47 = vpop.f32.mrb[2].mxu0 }
 0x107   :  { %v1995_v48 = vpack.c.bf16 %v291_v47, %v288_v45  ;;  %v293_v49 = vpop.f32.mrb[3].mxu0 }
 0x109   :  { %466 = vrot.lane.b32.xlu0 %v1995_v48, %s1731_s1  ;;  %1544 = vmatprep.subr.msk.bf16.mxu1 %vm482_vm1, %v1995_v48  ;;  %v508_v50 = vsel %vm482_vm1, %v1995_v48, 0 }
 0x10a   :  { %1441 = vmatpush3.bf16.xpose.msra.mxu1 %v508_v50 }
 0x10c   :  { %v296_v51 = vpop.f32.mrb[4].mxu0 }
 0x10d   :  { %v298_v52 = vpop.f32.mrb[5].mxu0 }
 0x10e   :  { %v299_v53 = vpop.f32.mrb[6].mxu0 }
 0x10f   :  { %v2003_v54 = vpack.c.bf16 %v299_v53, %v296_v51  ;;  %v301_v55 = vpop.f32.mrb[7].mxu0 }
 0x111   :  { %468 = vrot.lane.b32.xlu0 %v2003_v54, %s1731_s1  ;;  %1545 = vmatprep.subr.msk.bf16.mxu1 %vm482_vm1, %v2003_v54  ;;  %v511_v56 = vsel %vm482_vm1, %v2003_v54, 0 }
 0x112   :  { %1443 = vmatpush3.bf16.xpose.msra.mxu1 %v511_v56 }
 0x114   :  { %v304_v57 = vpop.f32.mrb[8].mxu0 }
 0x115   :  { %v306_v58 = vpop.f32.mrb[9].mxu0 }
 0x116   :  { %v307_v59 = vpop.f32.mrb[10].mxu0 }
 0x117   :  { %v2011_v60 = vpack.c.bf16 %v307_v59, %v304_v57  ;;  %v309_v61 = vpop.f32.mrb[11].mxu0 }
 0x119   :  { %470 = vrot.lane.b32.xlu1 %v2011_v60, %s1731_s1  ;;  %1546 = vmatprep.subr.msk.bf16.mxu1 %vm482_vm1, %v2011_v60  ;;  %v514_v62 = vsel %vm482_vm1, %v2011_v60, 0 }
 0x11a   :  { %1445 = vmatpush3.bf16.xpose.msra.mxu1 %v514_v62 }
 0x11c   :  { %v312_v63 = vpop.f32.mrb[12].mxu0 }
 0x11d   :  { %v314_v0 = vpop.f32.mrb[13].mxu0 }
 0x11e   :  { %v315_v1 = vpop.f32.mrb[14].mxu0 }
 0x11f   :  { %v2019_v2 = vpack.c.bf16 %v315_v1, %v312_v63  ;;  %v317_v3 = vpop.f32.mrb[15].mxu0 }
 0x121   :  { %472 = vrot.lane.b32.xlu1 %v2019_v2, %s1731_s1  ;;  %1547 = vmatprep.subr.msk.bf16.mxu1 %vm482_vm1, %v2019_v2  ;;  %v517_v4 = vsel %vm482_vm1, %v2019_v2, 0 }
 0x122   :  { %1447 = vmatpush3.bf16.xpose.msra.mxu1 %v517_v4 }
 0x124   :  { %v320_v5 = vpop.f32.mrb[16].mxu0 }
 0x125   :  { %v322_v6 = vpop.f32.mrb[17].mxu0 }
 0x126   :  { %v323_v7 = vpop.f32.mrb[18].mxu0 }
 0x127   :  { %v2027_v8 = vpack.c.bf16 %v323_v7, %v320_v5  ;;  %v325_v9 = vpop.f32.mrb[19].mxu0 }
 0x129   :  { %474 = vrot.lane.b32.xlu0 %v2027_v8, %s1731_s1  ;;  %1548 = vmatprep.subr.msk.bf16.mxu1 %vm482_vm1, %v2027_v8  ;;  %v520_v10 = vsel %vm482_vm1, %v2027_v8, 0 }
 0x12a   :  { %1449 = vmatpush3.bf16.xpose.msra.mxu1 %v520_v10 }
 0x12c   :  { %v328_v11 = vpop.f32.mrb[20].mxu0 }
 0x12d   :  { %v330_v12 = vpop.f32.mrb[21].mxu0 }
 0x12e   :  { %v331_v13 = vpop.f32.mrb[22].mxu0 }
 0x12f   :  { %v2035_v14 = vpack.c.bf16 %v331_v13, %v328_v11  ;;  %v333_v15 = vpop.f32.mrb[23].mxu0 }
 0x131   :  { %476 = vrot.lane.b32.xlu1 %v2035_v14, %s1731_s1  ;;  %1549 = vmatprep.subr.msk.bf16.mxu1 %vm482_vm1, %v2035_v14  ;;  %v523_v16 = vsel %vm482_vm1, %v2035_v14, 0 }
 0x132   :  { %1451 = vmatpush3.bf16.xpose.msra.mxu1 %v523_v16 }
 0x134   :  { %v336_v17 = vpop.f32.mrb[24].mxu0 }
 0x135   :  { %v338_v18 = vpop.f32.mrb[25].mxu0 }
 0x136   :  { %v339_v19 = vpop.f32.mrb[26].mxu0 }
 0x137   :  { %v2043_v20 = vpack.c.bf16 %v339_v19, %v336_v17  ;;  %v341_v21 = vpop.f32.mrb[27].mxu0 }
 0x139   :  { %478 = vrot.lane.b32.xlu0 %v2043_v20, %s1731_s1  ;;  %1550 = vmatprep.subr.msk.bf16.mxu1 %vm482_vm1, %v2043_v20  ;;  %v526_v22 = vsel %vm482_vm1, %v2043_v20, 0 }
 0x13a   :  { %1453 = vmatpush3.bf16.xpose.msra.mxu1 %v526_v22 }
 0x13c   :  { %v344_v23 = vpop.f32.mrb[28].mxu0 }
 0x13d   :  { %v346_v24 = vpop.f32.mrb[29].mxu0 }
 0x13e   :  { %v347_v25 = vpop.f32.mrb[30].mxu0 }
 0x13f   :  { %v2051_v26 = vpack.c.bf16 %v347_v25, %v344_v23  ;;  %v349_v27 = vpop.f32.mrb[31].mxu0 }
 0x141   :  { %480 = vrot.lane.b32.xlu1 %v2051_v26, %s1731_s1  ;;  %1551 = vmatprep.subr.msk.bf16.mxu1 %vm482_vm1, %v2051_v26  ;;  %v529_v28 = vsel %vm482_vm1, %v2051_v26, 0 }
 0x142   :  { %1455 = vmatpush3.bf16.xpose.msra.mxu1 %v529_v28 }
 0x144   :  { %v352_v29 = vpop.f32.mrb[32].mxu0 }
 0x145   :  { %v354_v30 = vpop.f32.mrb[33].mxu0 }
 0x146   :  { %v355_v31 = vpop.f32.mrb[34].mxu0 }
 0x147   :  { %v2059_v32 = vpack.c.bf16 %v355_v31, %v352_v29  ;;  %v357_v33 = vpop.f32.mrb[35].mxu0 }
 0x149   :  { %905 = vrot.lane.b32.xlu0 %v2059_v32, %s1731_s1  ;;  %1552 = vmatprep.subr.msk.bf16.mxu0 %vm482_vm1, %v2059_v32  ;;  %v946_v34 = vsel %vm482_vm1, %v2059_v32, 0 }
 0x14a   :  { %1493 = vmatpush3.bf16.xpose.msra.mxu0 %v946_v34 }
 0x14c   :  { %v360_v35 = vpop.f32.mrb[36].mxu0 }
 0x14d   :  { %v362_v36 = vpop.f32.mrb[37].mxu0 }
 0x14e   :  { %v363_v37 = vpop.f32.mrb[38].mxu0 }
 0x14f   :  { %v2067_v38 = vpack.c.bf16 %v363_v37, %v360_v35  ;;  %v365_v39 = vpop.f32.mrb[39].mxu0  ;;  %v415_v37 = vlaneseq }
 0x151   :  { %907 = vrot.lane.b32.xlu1 %v2067_v38, %s1731_s1  ;;  %1553 = vmatprep.subr.msk.bf16.mxu0 %vm482_vm1, %v2067_v38  ;;  %v949_v40 = vsel %vm482_vm1, %v2067_v38, 0 }
 0x152   :  { %1495 = vmatpush3.bf16.xpose.msra.mxu0 %v949_v40  ;;  %v2166_v40 = vand.u32 127, %v415_v37 }
 0x154   :  { %v368_v41 = vpop.f32.mrb[40].mxu0 }
 0x155   :  { %v370_v42 = vpop.f32.mrb[41].mxu0 }
 0x156   :  { %v371_v43 = vpop.f32.mrb[42].mxu0 }
 0x157   :  { %v2075_v44 = vpack.c.bf16 %v371_v43, %v368_v41  ;;  %v373_v45 = vpop.f32.mrb[43].mxu0 }
 0x159   :  { %909 = vrot.lane.b32.xlu0 %v2075_v44, %s1731_s1  ;;  %1554 = vmatprep.subr.msk.bf16.mxu0 %vm482_vm1, %v2075_v44  ;;  %v952_v46 = vsel %vm482_vm1, %v2075_v44, 0 }
 0x15a   :  { %1497 = vmatpush3.bf16.xpose.msra.mxu0 %v952_v46 }
 0x15c   :  { %v376_v47 = vpop.f32.mrb[44].mxu0 }
 0x15d   :  { %v378_v49 = vpop.f32.mrb[45].mxu0 }
 0x15e   :  { %v379_v50 = vpop.f32.mrb[46].mxu0 }
 0x15f   :  { %v2083_v51 = vpack.c.bf16 %v379_v50, %v376_v47  ;;  %v381_v52 = vpop.f32.mrb[47].mxu0 }
 0x161   :  { %911 = vrot.lane.b32.xlu1 %v2083_v51, %s1731_s1  ;;  %1555 = vmatprep.subr.msk.bf16.mxu0 %vm482_vm1, %v2083_v51  ;;  %v955_v53 = vsel %vm482_vm1, %v2083_v51, 0 }
 0x162   :  { %1499 = vmatpush3.bf16.xpose.msra.mxu0 %v955_v53 }
 0x164   :  { %v384_v55 = vpop.f32.mrb[48].mxu0 }
 0x165   :  { %v386_v56 = vpop.f32.mrb[49].mxu0 }
 0x166   :  { %v387_v57 = vpop.f32.mrb[50].mxu0 }
 0x167   :  { %v2091_v58 = vpack.c.bf16 %v387_v57, %v384_v55  ;;  %v389_v59 = vpop.f32.mrb[51].mxu0 }
 0x169   :  { %913 = vrot.lane.b32.xlu0 %v2091_v58, %s1731_s1  ;;  %1556 = vmatprep.subr.msk.bf16.mxu0 %vm482_vm1, %v2091_v58  ;;  %v958_v61 = vsel %vm482_vm1, %v2091_v58, 0 }
 0x16a   :  { %1501 = vmatpush3.bf16.xpose.msra.mxu0 %v958_v61 }
 0x16c   :  { %v392_v62 = vpop.f32.mrb[52].mxu0 }
 0x16d   :  { %v394_v63 = vpop.f32.mrb[53].mxu0 }
 0x16e   :  { %v395_v0 = vpop.f32.mrb[54].mxu0 }
 0x16f   :  { %v2099_v1 = vpack.c.bf16 %v395_v0, %v392_v62  ;;  %v397_v3 = vpop.f32.mrb[55].mxu0 }
 0x171   :  { %915 = vrot.lane.b32.xlu1 %v2099_v1, %s1731_s1  ;;  %1557 = vmatprep.subr.msk.bf16.mxu0 %vm482_vm1, %v2099_v1  ;;  %v961_v4 = vsel %vm482_vm1, %v2099_v1, 0 }
 0x172   :  { %1503 = vmatpush3.bf16.xpose.msra.mxu0 %v961_v4 }
 0x174   :  { %v400_v5 = vpop.f32.mrb[56].mxu0 }
 0x175   :  { %v402_v6 = vpop.f32.mrb[57].mxu0 }
 0x176   :  { %v403_v7 = vpop.f32.mrb[58].mxu0 }
 0x177   :  { %v2107_v9 = vpack.c.bf16 %v403_v7, %v400_v5  ;;  %v405_v10 = vpop.f32.mrb[59].mxu0 }
 0x179   :  { %917 = vrot.lane.b32.xlu0 %v2107_v9, %s1731_s1  ;;  %1558 = vmatprep.subr.msk.bf16.mxu0 %vm482_vm1, %v2107_v9  ;;  %v964_v11 = vsel %vm482_vm1, %v2107_v9, 0 }
 0x17a   :  { %1505 = vmatpush3.bf16.xpose.msra.mxu0 %v964_v11 }
 0x17b   :  { %v467_v12 = vpop.permute.xlu0 %466 }
 0x17c   :  { %v408_v13 = vpop.f32.mrb[60].mxu0  ;;  %1456 = vmatprep.mubr.msk.bf16.mxu1 %vm482_vm1, %v467_v12 }
 0x17d   :  { %798 = vrot.lane.b32.xlu0 %v2003_v54, %s1732_s0  ;;  %v410_v15 = vpop.f32.mrb[61].mxu0 }
 0x17e   :  { %v411_v16 = vpop.f32.mrb[62].mxu0 }
 0x17f   :  { %v2118_v17 = vpack.c.bf16 %v411_v16, %v408_v13  ;;  %v413_v18 = vpop.f32.mrb[63].mxu0 }
 0x181   :  { %804 = vrot.lane.b32.xlu0 %v2027_v8, %s1732_s0  ;;  %919 = vrot.lane.b32.xlu1 %v2118_v17, %s1731_s1  ;;  %v967_v19 = vsel %vm482_vm1, %v2118_v17, 0 }
 0x182   :  { %1559 = vmatprep.subr.msk.bf16.mxu0 %vm482_vm1, %v2118_v17 }
 0x183   :  { %v469_v21 = vpop.permute.xlu0 %468  ;;  %1507 = vmatpush3.bf16.xpose.msra.mxu0 %v967_v19 }
 0x184   :  { %1457 = vmatmul.mubr.msk.bf16.vlgmr.msra.gmra.mrb[0].mxu1 %vm482_vm1, %v469_v21 }
 0x185   :  { %808 = vrot.lane.b32.xlu0 %v2043_v20, %s1732_s0  ;;  %796 = vrot.lane.b32.xlu1 %v1995_v48, %s1732_s0 }
 0x189   :  { %800 = vrot.lane.b32.xlu1 %v2011_v60, %s1732_s0  ;;  %1236 = vrot.lane.b32.xlu0 %v2067_v38, %s1732_s0  ;;  %v2161_v38 = vshrl.u32 %v415_v37, 7 }
 0x18b   :  { %v471_v54 = vpop.permute.xlu1 %470  ;;  %v2164_v39 = vadd.s32 16, %v2161_v38  ;;  %v2171_v42 = vadd.s32 8, %v2161_v38  ;;  %vm434_vm4 = vcmp.le.s32.totalorder %v2166_v40, %v2161_v38  ;;  %v2186_v47 = vadd.s32 24, %v2161_v38 }
 0x18c   :  { %1460 = vmatprep.mubr.msk.bf16.mxu1 %vm482_vm1, %v471_v54  ;;  %v2211_v57 = vadd.s32 56, %v2161_v38  ;;  %v2214_v59 = vadd.s32 40, %v2161_v38  ;;  %v2235_v5 = vadd.s32 88, %v2161_v38  ;;  %v2238_v6 = vadd.s32 72, %v2161_v38 }
 0x18d   :  { %802 = vrot.lane.b32.xlu1 %v2019_v2, %s1732_s0  ;;  %vm436_vm2 = vcmp.le.s32.totalorder %v2166_v40, %v2164_v39  ;;  %vm435_vm3 = vcmp.le.s32.totalorder %v2166_v40, %v2171_v42  ;;  %vm437_vm5 = vcmp.le.s32.totalorder %v2166_v40, %v2186_v47  ;;  %v2257_v15 = vadd.s32 120, %v2161_v38 }
 0x18e   :  { %vm441_vm6 = vcmp.le.s32.totalorder %v2166_v40, %v2211_v57  ;;  %vm439_vm7 = vcmp.le.s32.totalorder %v2166_v40, %v2214_v59  ;;  %vm445_vm8 = vcmp.le.s32.totalorder %v2166_v40, %v2235_v5  ;;  %vm443_vm9 = vcmp.le.s32.totalorder %v2166_v40, %v2238_v6 }
 0x18f   :  { %v2260_v16 = vadd.s32 104, %v2161_v38  ;;  %vm449_vm10 = vcmp.le.s32.totalorder %v2166_v40, %v2257_v15  ;;  %v422_v54 = vadd.s32 48, %v2161_v38 }
 0x191   :  { %806 = vrot.lane.b32.xlu1 %v2035_v14, %s1732_s0  ;;  %vm447_vm11 = vcmp.le.s32.totalorder %v2166_v40, %v2260_v16  ;;  %vm440_vm12 = vcmp.le.s32.totalorder %v2166_v40, %v422_v54 }
 0x193   :  { %v473_v8 = vpop.permute.xlu1 %472 }
 0x194   :  { %1461 = vmatmul.mubr.msk.bf16.gmra.mrb[4].mxu1 %vm482_vm1, %v473_v8 }
 0x195   :  { %810 = vrot.lane.b32.xlu1 %v2051_v26, %s1732_s0 }
 0x199   :  { %1234 = vrot.lane.b32.xlu1 %v2059_v32, %s1732_s0 }
 0x19b   :  { %v475_v48 = vpop.permute.xlu0 %474 }
 0x19c   :  { %1464 = vmatprep.mubr.msk.bf16.mxu1 %vm482_vm1, %v475_v48 }
 0x19d   :  { %1238 = vrot.lane.b32.xlu1 %v2075_v44, %s1732_s0 }
 0x1a3   :  { %v477_v60 = vpop.permute.xlu1 %476 }
 0x1a4   :  { %1465 = vmatmul.mubr.msk.bf16.gmra.mrb[8].mxu1 %vm482_vm1, %v477_v60 }
 0x1ab   :  { %v479_v2 = vpop.permute.xlu0 %478 }
 0x1ac   :  { %1468 = vmatprep.mubr.msk.bf16.mxu1 %vm482_vm1, %v479_v2  ;;  %v420_v2 = vadd.s32 32, %v2161_v38 }
 0x1ae   :  { %vm438_vm13 = vcmp.le.s32.totalorder %v2166_v40, %v420_v2 }
 0x1b3   :  { %v481_v14 = vpop.permute.xlu1 %480 }
 0x1b4   :  { %1469 = vmatmul.mubr.msk.bf16.gmra.mrb[12].mxu1 %vm482_vm1, %v481_v14 }
 0x1bb   :  { %v906_v20 = vpop.permute.xlu0 %905 }
 0x1bc   :  { %1508 = vmatprep.mubr.msk.bf16.mxu0 %vm482_vm1, %v906_v20  ;;  %v426_v20 = vadd.s32 80, %v2161_v38 }
 0x1be   :  { %vm444_vm14 = vcmp.le.s32.totalorder %v2166_v40, %v426_v20 }
 0x1c3   :  { %v908_v22 = vpop.permute.xlu1 %907 }
 0x1c4   :  { %1509 = vmatmul.mubr.msk.bf16.vlgmr.msra.gmra.mrb[64].mxu0 %vm482_vm1, %v908_v22 }
 0x1cb   :  { %v910_v23 = vpop.permute.xlu0 %909 }
 0x1cc   :  { %1512 = vmatprep.mubr.msk.bf16.mxu0 %vm482_vm1, %v910_v23  ;;  %v424_v23 = vadd.s32 64, %v2161_v38 }
 0x1ce   :  { %vm442_vm15 = vcmp.le.s32.totalorder %v2166_v40, %v424_v23 }
 0x1d3   :  { %v912_v24 = vpop.permute.xlu1 %911 }
 0x1d4   :  { %1513 = vmatmul.mubr.msk.bf16.gmra.mrb[68].mxu0 %vm482_vm1, %v912_v24 }
 0x1db   :  { %v914_v25 = vpop.permute.xlu0 %913 }
 0x1dc   :  { %1516 = vmatprep.mubr.msk.bf16.mxu0 %vm482_vm1, %v914_v25 }
 0x1e3   :  { %v916_v26 = vpop.permute.xlu1 %915 }
 0x1e4   :  { %1517 = vmatmul.mubr.msk.bf16.gmra.mrb[72].mxu0 %vm482_vm1, %v916_v26 }
 0x1eb   :  { %v918_v27 = vpop.permute.xlu0 %917 }
 0x1ec   :  { %1520 = vmatprep.mubr.msk.bf16.mxu0 %vm482_vm1, %v918_v27 }
 0x1ef   :  { %v799_v30 = vpop.permute.xlu0 %798 }
 0x1f3   :  { %v920_v28 = vpop.permute.xlu1 %919  ;;  %v805_v33 = vpop.permute.xlu0 %804 }
 0x1f4   :  { %1521 = vmatmul.mubr.msk.bf16.gmra.mrb[76].mxu0 %vm482_vm1, %v920_v28 }
 0x1f7   :  { %v797_v29 = vpop.permute.xlu1 %796  ;;  %v809_v35 = vpop.permute.xlu0 %808 }
 0x1f8   :  { %820 = vxpose.xlu1.c.b16.start [1/8] (narrow) %v797_v29, 32  ;;  %v430_v29 = vadd.s32 112, %v2161_v38 }
 0x1fa   :  { %vm448_vm0 = vcmp.le.s32.totalorder %v2166_v40, %v430_v29 }
 0x1fb   :  { %v801_v31 = vpop.permute.xlu1 %800  ;;  %v2410_v54 = vpop.permute.xlu0 %1236 }
 0x1fc   :  { %821 = vxpose.xlu1.c.b16.cont [2/8] (narrow) %v799_v30, 32 }
 0x1ff   :  { %v803_v32 = vpop.permute.xlu1 %802 }
 0x200   :  { %822 = vxpose.xlu1.c.b16.cont [3/8] (narrow) %v801_v31, 32 }
 0x203   :  { %v807_v34 = vpop.permute.xlu1 %806 }
 0x204   :  { %823 = vxpose.xlu1.c.b16.cont [4/8] (narrow) %v803_v32, 32 }
 0x207   :  { %v811_v36 = vpop.permute.xlu1 %810 }
 0x208   :  { %824 = vxpose.xlu1.c.b16.cont [5/8] (narrow) %v805_v33, 32 }
 0x20b   :  { %v2168_v41 = vpop.permute.xlu1 %1234 }
 0x20c   :  { %825 = vxpose.xlu1.c.b16.cont [6/8] (narrow) %v807_v34, 32 }
 0x20f   :  { %v2188_v49 = vpop.permute.xlu1 %1238 }
 0x210   :  { %826 = vxpose.xlu1.c.b16.cont [7/8] (narrow) %v809_v35, 32  ;;  %v428_v35 = vadd.s32 96, %v2161_v38 }
 0x212   :  { %vm446_vm1 = vcmp.le.s32.totalorder %v2166_v40, %v428_v35 }
 0x214   :  { %827 = vxpose.xlu1.c.b16.end [8/8] (narrow) %v811_v36, 32 }
 0x257   :  { %v1458_v43 = vpop.f32.mrb[0].mxu1 }
 0x258   :  { %v565_v44 = vpop.f32.mrb[1].mxu1  ;;  %v2178_v45 = vsel %vm436_vm2, %v1458_v43, -1e+30 }
 0x259   :  { %v1459_v46 = vpop.f32.mrb[2].mxu1  ;;  %648 = vmax.xlane.f32.xlu0 %v2178_v45  ;;  %v2199_v53 = vsel %vm434_vm4, %v565_v44, -1e+30 }
 0x25a   :  { %v568_v50 = vpop.f32.mrb[3].mxu1  ;;  %v2207_v56 = vsel %vm437_vm5, %v1459_v46, -1e+30 }
 0x25b   :  { %v2193_v52 = vsel %vm435_vm3, %v568_v50, -1e+30 }
 0x25c   :  { %646 = vmax.xlane.f32.xlu1 %v2193_v52 }
 0x25d   :  { %644 = vmax.xlane.f32.xlu0 %v2199_v53 }
 0x25e   :  { %v828_v55 = vpop.trf.xlu1 }
 0x25f   :  { %1488 = vmatprep.mubr.bf16.mxu1 %v828_v55 }
 0x261   :  { %650 = vmax.xlane.f32.xlu0 %v2207_v56 }
 0x262   :  { %v2412_v15 = vpop.trf.xlu1 }
 0x267   :  { %v1462_v61 = vpop.f32.mrb[4].mxu1 }
 0x268   :  { %v581_v62 = vpop.f32.mrb[5].mxu1  ;;  %v2283_v14 = vsel %vm440_vm12, %v1462_v61, -1e+30 }
 0x269   :  { %v1463_v63 = vpop.f32.mrb[6].mxu1  ;;  %v2290_v22 = vsel %vm438_vm13, %v581_v62, -1e+30 }
 0x26a   :  { %v2223_v0 = vsel %vm441_vm6, %v1463_v63, -1e+30  ;;  %v584_v3 = vpop.f32.mrb[7].mxu1 }
 0x26b   :  { %658 = vmax.xlane.f32.xlu0 %v2223_v0  ;;  %v2229_v4 = vsel %vm439_vm7, %v584_v3, -1e+30 }
 0x26d   :  { %1240 = vrot.lane.b32.xlu1 %v2083_v51, %s1732_s0 }
 0x26f   :  { %654 = vmax.xlane.f32.xlu0 %v2229_v4 }
 0x277   :  { %v1466_v7 = vpop.f32.mrb[8].mxu1 }
 0x278   :  { %v597_v10 = vpop.f32.mrb[9].mxu1  ;;  %v2297_v26 = vsel %vm444_vm14, %v1466_v7, -1e+30 }
 0x279   :  { %v1467_v11 = vpop.f32.mrb[10].mxu1  ;;  %v2325_v34 = vsel %vm442_vm15, %v597_v10, -1e+30 }
 0x27a   :  { %v2247_v51 = vsel %vm445_vm8, %v1467_v11, -1e+30  ;;  %v600_v12 = vpop.f32.mrb[11].mxu1 }
 0x27b   :  { %666 = vmax.xlane.f32.xlu0 %v2247_v51  ;;  %v2253_v13 = vsel %vm443_vm9, %v600_v12, -1e+30 }
 0x27f   :  { %662 = vmax.xlane.f32.xlu0 %v2253_v13 }
 0x287   :  { %v1470_v18 = vpop.f32.mrb[12].mxu1 }
 0x288   :  { %v613_v19 = vpop.f32.mrb[13].mxu1  ;;  %v2333_v36 = vsel %vm448_vm0, %v1470_v18, -1e+30 }
 0x289   :  { %v1471_v21 = vpop.f32.mrb[14].mxu1  ;;  %v2339_v37 = vsel %vm446_vm1, %v613_v19, -1e+30 }
 0x28a   :  { %v2270_v8 = vsel %vm449_vm10, %v1471_v21, -1e+30  ;;  %v616_v48 = vpop.f32.mrb[15].mxu1 }
 0x28b   :  { %674 = vmax.xlane.f32.xlu0 %v2270_v8  ;;  %v2276_v60 = vsel %vm447_vm11, %v616_v48, -1e+30 }
 0x28f   :  { %670 = vmax.xlane.f32.xlu0 %v2276_v60 }
 0x291   :  { %656 = vmax.xlane.f32.xlu1 %v2283_v14 }
 0x295   :  { %652 = vmax.xlane.f32.xlu1 %v2290_v22 }
 0x297   :  { %v1510_v24 = vpop.f32.mrb[64].mxu0 }
 0x298   :  { %v1003_v25 = vpop.f32.mrb[65].mxu0  ;;  %v2302_v27 = vsel %vm436_vm2, %v1510_v24, -1e+30 }
 0x299   :  { %664 = vmax.xlane.f32.xlu1 %v2297_v26  ;;  %v1511_v28 = vpop.f32.mrb[66].mxu0  ;;  %v2310_v30 = vsel %vm434_vm4, %v1003_v25, -1e+30 }
 0x29a   :  { %v2315_v31 = vsel %vm437_vm5, %v1511_v28, -1e+30  ;;  %v1006_v32 = vpop.f32.mrb[67].mxu0 }
 0x29b   :  { %1088 = vmax.xlane.f32.xlu0 %v2315_v31  ;;  %v2321_v33 = vsel %vm435_vm3, %v1006_v32, -1e+30 }
 0x29d   :  { %660 = vmax.xlane.f32.xlu1 %v2325_v34 }
 0x29f   :  { %1084 = vmax.xlane.f32.xlu0 %v2321_v33 }
 0x2a1   :  { %672 = vmax.xlane.f32.xlu1 %v2333_v36 }
 0x2a5   :  { %668 = vmax.xlane.f32.xlu1 %v2339_v37 }
 0x2a7   :  { %v1514_v39 = vpop.f32.mrb[68].mxu0 }
 0x2a8   :  { %v1019_v42 = vpop.f32.mrb[69].mxu0  ;;  %v2357_v47 = vsel %vm440_vm12, %v1514_v39, -1e+30 }
 0x2a9   :  { %1086 = vmax.xlane.f32.xlu1 %v2302_v27  ;;  %v1515_v38 = vpop.f32.mrb[70].mxu0  ;;  %v2363_v50 = vsel %vm438_vm13, %v1019_v42, -1e+30 }
 0x2aa   :  { %v2346_v43 = vsel %vm441_vm6, %v1515_v38, -1e+30  ;;  %v1022_v44 = vpop.f32.mrb[71].mxu0 }
 0x2ab   :  { %1096 = vmax.xlane.f32.xlu0 %v2346_v43  ;;  %v2352_v46 = vsel %vm439_vm7, %v1022_v44, -1e+30 }
 0x2ad   :  { %1082 = vmax.xlane.f32.xlu1 %v2310_v30 }
 0x2af   :  { %1092 = vmax.xlane.f32.xlu0 %v2352_v46 }
 0x2b1   :  { %1094 = vmax.xlane.f32.xlu1 %v2357_v47 }
 0x2b5   :  { %1090 = vmax.xlane.f32.xlu1 %v2363_v50 }
 0x2b7   :  { %v1518_v55 = vpop.f32.mrb[72].mxu0 }
 0x2b8   :  { %v1035_v57 = vpop.f32.mrb[73].mxu0  ;;  %v2368_v59 = vsel %vm444_vm14, %v1518_v55, -1e+30 }
 0x2b9   :  { %1102 = vmax.xlane.f32.xlu1 %v2368_v59  ;;  %v1519_v61 = vpop.f32.mrb[74].mxu0  ;;  %v2378_v63 = vsel %vm442_vm15, %v1035_v57, -1e+30 }
 0x2ba   :  { %v2374_v62 = vsel %vm445_vm8, %v1519_v61, -1e+30  ;;  %v1038_v3 = vpop.f32.mrb[75].mxu0 }
 0x2bb   :  { %1104 = vmax.xlane.f32.xlu0 %v2374_v62  ;;  %v2384_v7 = vsel %vm443_vm9, %v1038_v3, -1e+30 }
 0x2bd   :  { %1098 = vmax.xlane.f32.xlu1 %v2378_v63 }
 0x2bf   :  { %1100 = vmax.xlane.f32.xlu0 %v2384_v7 }
 0x2c7   :  { %v1522_v10 = vpop.f32.mrb[76].mxu0 }
 0x2c8   :  { %v1051_v5 = vpop.f32.mrb[77].mxu0  ;;  %v2390_v11 = vsel %vm448_vm0, %v1522_v10, -1e+30 }
 0x2c9   :  { %1110 = vmax.xlane.f32.xlu1 %v2390_v11  ;;  %v1523_v12 = vpop.f32.mrb[78].mxu0  ;;  %v2400_v6 = vsel %vm446_vm1, %v1051_v5, -1e+30 }
 0x2ca   :  { %v2396_v18 = vsel %vm449_vm10, %v1523_v12, -1e+30  ;;  %v1054_v19 = vpop.f32.mrb[79].mxu0 }
 0x2cb   :  { %1112 = vmax.xlane.f32.xlu0 %v2396_v18  ;;  %v2406_v21 = vsel %vm447_vm11, %v1054_v19, -1e+30 }
 0x2cd   :  { %1106 = vmax.xlane.f32.xlu1 %v2400_v6 }
 0x2cf   :  { %1108 = vmax.xlane.f32.xlu0 %v2406_v21 }
 0x2e6   :  { %v649_v48 = vpop.xlane.xlu0 %648 }
 0x2e7   :  { %v678_v2 = vsub.f32 %v2178_v45, %v649_v48 }
 0x2e9   :  { %v696_v20 = vmul.f32 1.442695, %v678_v2  ;;  %v647_v25 = vpop.xlane.xlu1 %646 }
 0x2ea   :  { %v645_v23 = vpop.xlane.xlu0 %644  ;;  %v677_v28 = vsub.f32 %v2193_v52, %v647_v25 }
 0x2eb   :  { %1578 = vpow2.f32 %v696_v20  ;;  %v676_v24 = vsub.f32 %v2199_v53, %v645_v23 }
 0x2ec   :  { %v694_v35 = vmul.f32 1.442695, %v677_v28 }
 0x2ed   :  { %v692_v40 = vmul.f32 1.442695, %v676_v24  ;;  %v2443_v2 = vpop.permute.xlu1 %1240 }
 0x2ee   :  { %v651_v16 = vpop.xlane.xlu0 %650 }
 0x2ef   :  { %1580 = vpow2.f32 %v692_v40  ;;  %v679_v29 = vsub.f32 %v2207_v56, %v651_v16 }
 0x2f1   :  { %v698_v32 = vmul.f32 1.442695, %v679_v29 }
 0x2f3   :  { %1582 = vpow2.f32 %v698_v32 }
 0x2f4   :  { %1584 = vpow2.f32 %v694_v35 }
 0x2f5   :  { %v2418_v39 = vpop.eup %1578 }
 0x2f6   :  { %728 = vadd.xlane.f32.xlu1 %v2418_v39 }
 0x2f8   :  { %v659_v45 = vpop.xlane.xlu0 %658 }
 0x2f9   :  { %v2421_v42 = vpop.eup %1580  ;;  %v683_v53 = vsub.f32 %v2223_v0, %v659_v45 }
 0x2fa   :  { %724 = vadd.xlane.f32.xlu1 %v2421_v42 }
 0x2fb   :  { %v706_v38 = vmul.f32 1.442695, %v683_v53 }
 0x2fc   :  { %v655_v52 = vpop.xlane.xlu0 %654 }
 0x2fd   :  { %v2425_v44 = vpop.eup %1582  ;;  %1586 = vpow2.f32 %v706_v38  ;;  %v681_v56 = vsub.f32 %v2229_v4, %v655_v52 }
 0x2fe   :  { %730 = vadd.xlane.f32.xlu0 %v2425_v44  ;;  %v2429_v57 = vpop.eup %1584 }
 0x2ff   :  { %v702_v55 = vmul.f32 1.442695, %v681_v56 }
 0x301   :  { %1588 = vpow2.f32 %v702_v55 }
 0x302   :  { %726 = vadd.xlane.f32.xlu0 %v2429_v57 }
 0x307   :  { %v2432_v61 = vpop.eup %1586 }
 0x308   :  { %v667_v0 = vpop.xlane.xlu0 %666  ;;  %738 = vadd.xlane.f32.xlu0 %v2432_v61 }
 0x309   :  { %v687_v3 = vsub.f32 %v2247_v51, %v667_v0 }
 0x30b   :  { %v2436_v10 = vpop.eup %1588  ;;  %v714_v5 = vmul.f32 1.442695, %v687_v3 }
 0x30c   :  { %v663_v12 = vpop.xlane.xlu0 %662  ;;  %734 = vadd.xlane.f32.xlu0 %v2436_v10 }
 0x30d   :  { %1590 = vpow2.f32 %v714_v5  ;;  %v685_v4 = vsub.f32 %v2253_v13, %v663_v12 }
 0x30f   :  { %v710_v19 = vmul.f32 1.442695, %v685_v4 }
 0x311   :  { %1592 = vpow2.f32 %v710_v19 }
 0x317   :  { %v2440_v48 = vpop.eup %1590 }
 0x318   :  { %746 = vadd.xlane.f32.xlu0 %v2440_v48  ;;  %v675_v40 = vpop.xlane.xlu0 %674 }
 0x319   :  { %v691_v35 = vsub.f32 %v2270_v8, %v675_v40 }
 0x31b   :  { %v2445_v20 = vpop.eup %1592  ;;  %v722_v56 = vmul.f32 1.442695, %v691_v35 }
 0x31c   :  { %742 = vadd.xlane.f32.xlu0 %v2445_v20  ;;  %v671_v53 = vpop.xlane.xlu0 %670 }
 0x31e   :  { %v657_v51 = vpop.xlane.xlu1 %656 }
 0x31f   :  { %v682_v23 = vsub.f32 %v2283_v14, %v657_v51 }
 0x321   :  { %v704_v24 = vmul.f32 1.442695, %v682_v23 }
 0x322   :  { %v653_v25 = vpop.xlane.xlu1 %652 }
 0x323   :  { %1594 = vpow2.f32 %v704_v24  ;;  %v680_v13 = vsub.f32 %v2290_v22, %v653_v25  ;;  %v689_v22 = vsub.f32 %v2276_v60, %v671_v53 }
 0x325   :  { %v700_v16 = vmul.f32 1.442695, %v680_v13  ;;  %v718_v3 = vmul.f32 1.442695, %v689_v22 }
 0x326   :  { %v665_v28 = vpop.xlane.xlu1 %664 }
 0x327   :  { %1596 = vpow2.f32 %v700_v16  ;;  %v686_v29 = vsub.f32 %v2297_v26, %v665_v28 }
 0x328   :  { %v1089_v40 = vpop.xlane.xlu0 %1088 }
 0x329   :  { %v712_v32 = vmul.f32 1.442695, %v686_v29  ;;  %v1117_v29 = vsub.f32 %v2315_v31, %v1089_v40 }
 0x32a   :  { %v661_v45 = vpop.xlane.xlu1 %660 }
 0x32b   :  { %1598 = vpow2.f32 %v712_v32  ;;  %v684_v38 = vsub.f32 %v2325_v34, %v661_v45 }
 0x32c   :  { %v1085_v45 = vpop.xlane.xlu0 %1084 }
 0x32d   :  { %v2453_v14 = vpop.eup %1594  ;;  %v708_v52 = vmul.f32 1.442695, %v684_v38  ;;  %v1136_v38 = vmul.f32 1.442695, %v1117_v29 }
 0x32e   :  { %v673_v55 = vpop.xlane.xlu1 %672  ;;  %736 = vadd.xlane.f32.xlu1 %v2453_v14 }
 0x32f   :  { %1600 = vpow2.f32 %v708_v52  ;;  %v690_v26 = vsub.f32 %v2333_v36, %v673_v55  ;;  %v1115_v52 = vsub.f32 %v2321_v33, %v1085_v45 }
 0x330   :  { %1602 = vpow2.f32 %v722_v56 }
 0x331   :  { %v2458_v0 = vpop.eup %1596  ;;  %v720_v8 = vmul.f32 1.442695, %v690_v26 }
 0x332   :  { %v669_v5 = vpop.xlane.xlu1 %668  ;;  %732 = vadd.xlane.f32.xlu1 %v2458_v0 }
 0x333   :  { %1604 = vpow2.f32 %v720_v8  ;;  %v688_v34 = vsub.f32 %v2339_v37, %v669_v5 }
 0x334   :  { %1606 = vpow2.f32 %v718_v3 }
 0x335   :  { %v2462_v12 = vpop.eup %1598  ;;  %v716_v60 = vmul.f32 1.442695, %v688_v34 }
 0x336   :  { %744 = vadd.xlane.f32.xlu1 %v2462_v12  ;;  %v1087_v23 = vpop.xlane.xlu1 %1086 }
 0x337   :  { %1608 = vpow2.f32 %v716_v60  ;;  %v1116_v16 = vsub.f32 %v2302_v27, %v1087_v23 }
 0x338   :  { %v1097_v27 = vpop.xlane.xlu0 %1096 }
 0x339   :  { %v2465_v4 = vpop.eup %1600  ;;  %v1134_v32 = vmul.f32 1.442695, %v1116_v16 }
 0x33a   :  { %740 = vadd.xlane.f32.xlu1 %v2465_v4  ;;  %v2468_v36 = vpop.eup %1602  ;;  %v1083_v24 = vpop.xlane.xlu1 %1082 }
 0x33b   :  { %v1114_v28 = vsub.f32 %v2310_v30, %v1083_v24  ;;  %1610 = vpow2.f32 %v1134_v32  ;;  %v1132_v30 = vmul.f32 1.442695, %v1115_v52 }
 0x33c   :  { %v1093_v26 = vpop.xlane.xlu0 %1092 }
 0x33d   :  { %v2470_v19 = vpop.eup %1604  ;;  %v1130_v53 = vmul.f32 1.442695, %v1114_v28 }
 0x33e   :  { %754 = vadd.xlane.f32.xlu1 %v2468_v36  ;;  %752 = vadd.xlane.f32.xlu0 %v2470_v19  ;;  %v2474_v37 = vpop.eup %1606  ;;  %v1095_v25 = vpop.xlane.xlu1 %1094 }
 0x33f   :  { %1612 = vpow2.f32 %v1130_v53 }
 0x340   :  { %1614 = vpow2.f32 %v1136_v38 }
 0x341   :  { %v2476_v51 = vpop.eup %1608 }
 0x342   :  { %750 = vadd.xlane.f32.xlu1 %v2474_v37  ;;  %748 = vadd.xlane.f32.xlu0 %v2476_v51  ;;  %v1091_v13 = vpop.xlane.xlu1 %1090 }
 0x343   :  { %v1118_v56 = vsub.f32 %v2363_v50, %v1091_v13 }
 0x345   :  { %v1138_v31 = vmul.f32 1.442695, %v1118_v56  ;;  %v2493_v8 = vpop.eup %1610 }
 0x346   :  { %v2487_v35 = vpop.xlane.xlu1 %1102 }
 0x348   :  { %v1105_v3 = vpop.xlane.xlu0 %1104 }
 0x349   :  { %v2495_v33 = vpop.eup %1612 }
 0x34a   :  { %v1099_v22 = vpop.xlane.xlu1 %1098  ;;  %v2499_v50 = vpop.eup %1614 }
 0x34b   :  { %v1122_v55 = vsub.f32 %v2378_v63, %v1099_v22 }
 0x34c   :  { %v1101_v60 = vpop.xlane.xlu0 %1100 }
 0x353   :  { %1242 = vrot.lane.b32.xlu1 %v2091_v58, %s1732_s0  ;;  %v1120_v58 = vsub.f32 %v2357_v47, %v1095_v25  ;;  %v1146_v47 = vmul.f32 1.442695, %v1122_v55 }
 0x356   :  { %v1111_v34 = vpop.xlane.xlu1 %1110 }
 0x358   :  { %1244 = vrot.lane.b32.xlu0 %v2099_v1, %s1732_s0  ;;  %v1142_v1 = vmul.f32 1.442695, %v1120_v58  ;;  %v1113_v25 = vpop.xlane.xlu0 %1112 }
 0x35a   :  { %1616 = vpow2.f32 %v1142_v1  ;;  %v1107_v24 = vpop.xlane.xlu1 %1106 }
 0x35b   :  { %1618 = vpow2.f32 %v1132_v30 }
 0x35c   :  { %1620 = vpow2.f32 %v1138_v31  ;;  %v2514_v16 = vpop.xlane.xlu0 %1108 }
 0x35d   :  { %1622 = vpow2.f32 %v1146_v47  ;;  %v1129_v47 = vsub.f32 %v2396_v18, %v1113_v25  ;;  %v1128_v18 = vsub.f32 %v2390_v11, %v1111_v34 }
 0x364   :  { %v2501_v5 = vpop.eup %1616 }
 0x365   :  { %v2505_v63 = vpop.eup %1618 }
 0x366   :  { %v2507_v23 = vpop.eup %1620 }
 0x367   :  { %v2511_v13 = vpop.eup %1622 }
 0x377   :  { %1166 = vadd.xlane.f32.xlu1 %v2493_v8  ;;  %1162 = vadd.xlane.f32.xlu0 %v2495_v33 }
 0x37b   :  { %1174 = vadd.xlane.f32.xlu1 %v2501_v5  ;;  %1168 = vadd.xlane.f32.xlu0 %v2499_v50 }
 0x37f   :  { %1170 = vadd.xlane.f32.xlu1 %v2507_v23  ;;  %1164 = vadd.xlane.f32.xlu0 %v2505_v63 }
 0x383   :  { %1178 = vadd.xlane.f32.xlu1 %v2511_v13  ;;  %v729_v40 = vpop.xlane.xlu1 %728 }
 0x387   :  { %v725_v28 = vpop.xlane.xlu1 %724 }
 0x388   :  { %1624 = vrcp.f32 %v725_v28  ;;  %v1158_v28 = vmul.f32 1.442695, %v1128_v18 }
 0x38b   :  { %v731_v29 = vpop.xlane.xlu0 %730 }
 0x38c   :  { %1626 = vrcp.f32 %v731_v29 }
 0x38d   :  { %1628 = vrcp.f32 %v729_v40 }
 0x38f   :  { %v727_v32 = vpop.xlane.xlu0 %726 }
 0x390   :  { %1630 = vrcp.f32 %v727_v32 }
 0x392   :  { %v1625_v45 = vpop.eup %1624 }
 0x393   :  { %v772_v52 = vmul.f32 %v1625_v45, %v2421_v42  ;;  %v1124_v42 = vsub.f32 %v2368_v59, %v2487_v35 }
 0x394   :  { %1248 = vrot.lane.b32.xlu1 %v2118_v17, %s1732_s0  ;;  %v1121_v17 = vsub.f32 %v2346_v43, %v1097_v27  ;;  %v1123_v27 = vsub.f32 %v2384_v7, %v1101_v60  ;;  %v1127_v60 = vsub.f32 %v2406_v21, %v2514_v16 }
 0x395   :  { %1246 = vrot.lane.b32.xlu0 %v2107_v9, %s1732_s0  ;;  %v1119_v9 = vsub.f32 %v2352_v46, %v1093_v26  ;;  %v739_v26 = vpop.xlane.xlu0 %738 }
 0x396   :  { %v1627_v53 = vpop.eup %1626  ;;  %v1144_v55 = vmul.f32 1.442695, %v1121_v17  ;;  %v1148_v25 = vmul.f32 1.442695, %v1123_v27 }
 0x397   :  { %v1629_v58 = vpop.eup %1628  ;;  %v775_v56 = vmul.f32 %v1627_v53, %v2425_v44  ;;  %v1140_v40 = vmul.f32 1.442695, %v1119_v9  ;;  %v1160_v44 = vmul.f32 1.442695, %v1129_v47 }
 0x398   :  { %v774_v30 = vmul.f32 %v1629_v58, %v2418_v39  ;;  %1632 = vpow2.f32 %v1144_v55  ;;  %v1150_v39 = vmul.f32 1.442695, %v1124_v42 }
 0x399   :  { %1634 = vpow2.f32 %v1140_v40  ;;  %v735_v7 = vpop.xlane.xlu0 %734 }
 0x39a   :  { %v1631_v38 = vpop.eup %1630  ;;  %v789_v31 = vpack.c.bf16 %v775_v56, %v774_v30  ;;  %1636 = vpow2.f32 %v1160_v44 }
 0x39b   :  { %v773_v1 = vmul.f32 %v1631_v38, %v2429_v57  ;;  %v1125_v57 = vsub.f32 %v2374_v62, %v1105_v3  ;;  %1638 = vpow2.f32 %v1150_v39  ;;  %v1126_v62 = vsub.f32 %v2400_v6, %v1107_v24 }
 0x39c   :  { %v1156_v6 = vmul.f32 1.442695, %v1127_v60 }
 0x39d   :  { %v788_v22 = vpack.c.bf16 %v773_v1, %v772_v52  ;;  %v1152_v43 = vmul.f32 1.442695, %v1125_v57  ;;  %v1154_v34 = vmul.f32 1.442695, %v1126_v62 }
 0x39f   :  { %1472 = vmatprep.subr.bf16.mxu1 %v788_v22  ;;  %1640 = vpow2.f32 %v1152_v43 }
 0x3a0   :  { %1473 = vmatpush3.bf16.xpose.msra.mxu1 %v788_v22  ;;  %1642 = vpow2.f32 %v1148_v25 }
 0x3a1   :  { %1474 = vmatprep.subr.bf16.mxu1 %v789_v31  ;;  %1644 = vpow2.f32 %v1158_v28 }
 0x3a2   :  { %v2531_v46 = vpop.eup %1632  ;;  %1646 = vrcp.f32 %v735_v7 }
 0x3a3   :  { %v2535_v59 = vpop.eup %1634 }
 0x3a4   :  { %v2537_v35 = vpop.eup %1636 }
 0x3a5   :  { %v2542_v3 = vpop.eup %1638  ;;  %v747_v29 = vpop.xlane.xlu0 %746 }
 0x3a8   :  { %1475 = vmatpush3.bf16.xpose.msra.mxu1 %v789_v31 }
 0x3a9   :  { %v2547_v32 = vpop.eup %1640  ;;  %v743_v58 = vpop.xlane.xlu0 %742 }
 0x3aa   :  { %v2550_v24 = vpop.eup %1642 }
 0x3ab   :  { %v2553_v21 = vpop.eup %1644 }
 0x3ac   :  { %v1647_v16 = vpop.eup %1646 }
 0x3ad   :  { %v777_v31 = vmul.f32 %v1647_v16, %v2436_v10 }
 0x3b4   :  { %1176 = vadd.xlane.f32.xlu0 %v2531_v46 }
 0x3b8   :  { %1192 = vadd.xlane.f32.xlu1 %v2537_v35  ;;  %1172 = vadd.xlane.f32.xlu0 %v2535_v59 }
 0x3bb   :  { %v737_v11 = vpop.xlane.xlu1 %736 }
 0x3bc   :  { %1182 = vadd.xlane.f32.xlu0 %v2542_v3  ;;  %1648 = vrcp.f32 %v737_v11 }
 0x3bd   :  { %1650 = vrcp.f32 %v739_v26 }
 0x3bf   :  { %v733_v45 = vpop.xlane.xlu1 %732 }
 0x3c0   :  { %1652 = vrcp.f32 %v733_v45  ;;  %1184 = vadd.xlane.f32.xlu0 %v2547_v32 }
 0x3c1   :  { %1654 = vpow2.f32 %v1154_v34 }
 0x3c2   :  { %1656 = vpow2.f32 %v1156_v6 }
 0x3c3   :  { %v745_v53 = vpop.xlane.xlu1 %744  ;;  %1658 = vrcp.f32 %v743_v58 }
 0x3c4   :  { %1180 = vadd.xlane.f32.xlu0 %v2550_v24 }
 0x3c6   :  { %v1649_v52 = vpop.eup %1648 }
 0x3c7   :  { %v741_v38 = vpop.xlane.xlu1 %740  ;;  %v1651_v1 = vpop.eup %1650  ;;  %v778_v17 = vmul.f32 %v1649_v52, %v2453_v14 }
 0x3c8   :  { %1660 = vrcp.f32 %v741_v38  ;;  %1190 = vadd.xlane.f32.xlu0 %v2553_v21  ;;  %v779_v40 = vmul.f32 %v1651_v1, %v2432_v61 }
 0x3c9   :  { %1662 = vrcp.f32 %v745_v53 }
 0x3ca   :  { %v1653_v56 = vpop.eup %1652  ;;  %v791_v44 = vpack.c.bf16 %v779_v40, %v778_v17  ;;  %1664 = vrcp.f32 %v747_v29 }
 0x3cb   :  { %v2556_v22 = vpop.eup %1654  ;;  %v776_v30 = vmul.f32 %v1653_v56, %v2458_v0  ;;  %v755_v9 = vpop.xlane.xlu1 %754 }
 0x3cc   :  { %1186 = vadd.xlane.f32.xlu0 %v2556_v22  ;;  %v753_v55 = vpop.xlane.xlu0 %752  ;;  %v2563_v42 = vpop.eup %1656 }
 0x3cd   :  { %v790_v47 = vpack.c.bf16 %v777_v31, %v776_v30  ;;  %v1659_v0 = vpop.eup %1658 }
 0x3ce   :  { %v781_v43 = vmul.f32 %v1659_v0, %v2445_v20 }
 0x3cf   :  { %1476 = vmatprep.subr.bf16.mxu1 %v790_v47  ;;  %v751_v14 = vpop.xlane.xlu1 %750 }
 0x3d0   :  { %1188 = vadd.xlane.f32.xlu0 %v2563_v42  ;;  %1477 = vmatpush3.bf16.xpose.msra.mxu1 %v790_v47  ;;  %v749_v39 = vpop.xlane.xlu0 %748  ;;  %1666 = vrcp.f32 %v751_v14 }
 0x3d1   :  { %1478 = vmatprep.subr.bf16.mxu1 %v791_v44  ;;  %1668 = vrcp.f32 %v749_v39 }
 0x3d2   :  { %v1661_v10 = vpop.eup %1660  ;;  %1670 = vrcp.f32 %v755_v9 }
 0x3d3   :  { %v780_v57 = vmul.f32 %v1661_v10, %v2465_v4  ;;  %v1663_v27 = vpop.eup %1662  ;;  %1672 = vrcp.f32 %v753_v55 }
 0x3d4   :  { %v1665_v18 = vpop.eup %1664  ;;  %v782_v26 = vmul.f32 %v1663_v27, %v2462_v12  ;;  %v1245_v45 = vpop.permute.xlu0 %1244 }
 0x3d5   :  { %v792_v61 = vpack.c.bf16 %v781_v43, %v780_v57  ;;  %v783_v25 = vmul.f32 %v1665_v18, %v2440_v48 }
 0x3d7   :  { %v793_v62 = vpack.c.bf16 %v783_v25, %v782_v26 }
 0x3d8   :  { %1479 = vmatpush3.bf16.xpose.msra.mxu1 %v791_v44 }
 0x3d9   :  { %1480 = vmatprep.subr.bf16.mxu1 %v792_v61 }
 0x3da   :  { %v1667_v28 = vpop.eup %1666 }
 0x3db   :  { %v1669_v7 = vpop.eup %1668  ;;  %v785_v20 = vmul.f32 %v1667_v28, %v2474_v37 }
 0x3dc   :  { %v784_v4 = vmul.f32 %v1669_v7, %v2476_v51  ;;  %v1671_v11 = vpop.eup %1670  ;;  %v1243_v51 = vpop.permute.xlu1 %1242 }
 0x3dd   :  { %v1673_v60 = vpop.eup %1672  ;;  %v787_v29 = vmul.f32 %v1671_v11, %v2468_v36 }
 0x3de   :  { %v794_v34 = vpack.c.bf16 %v785_v20, %v784_v4  ;;  %v786_v12 = vmul.f32 %v1673_v60, %v2470_v19 }
 0x3e0   :  { %1481 = vmatpush3.bf16.xpose.msra.mxu1 %v792_v61  ;;  %v795_v48 = vpack.c.bf16 %v787_v29, %v786_v12 }
 0x3e1   :  { %1482 = vmatprep.subr.bf16.mxu1 %v793_v62 }
 0x3e8   :  { %1483 = vmatpush3.bf16.xpose.msra.mxu1 %v793_v62 }
 0x3e9   :  { %1484 = vmatprep.subr.bf16.mxu1 %v794_v34 }
 0x3f0   :  { %1485 = vmatpush3.bf16.xpose.msra.mxu1 %v794_v34 }
 0x3f1   :  { %1486 = vmatprep.subr.bf16.mxu1 %v795_v48 }
 0x3f8   :  { %1487 = vmatpush3.bf16.xpose.msra.mxu1 %v795_v48 }
 0x3fd   :  { %1258 = vxpose.xlu0.c.b16.start [1/8] (narrow) %v2168_v41, 32 }
 0x3ff   :  { %1489 = vmatmul.mubr.bf16.vlgmr.msra.gmra.mrb[16].mxu1 %v2412_v15 }
 0x401   :  { %1259 = vxpose.xlu0.c.b16.cont [2/8] (narrow) %v2410_v54, 32 }
 0x404   :  { %v1167_v37 = vpop.xlane.xlu1 %1166  ;;  %v1163_v6 = vpop.xlane.xlu0 %1162 }
 0x405   :  { %1260 = vxpose.xlu0.c.b16.cont [3/8] (narrow) %v2188_v49, 32  ;;  %1674 = vrcp.f32 %v1163_v6 }
 0x408   :  { %v1175_v53 = vpop.xlane.xlu1 %1174  ;;  %v1169_v19 = vpop.xlane.xlu0 %1168 }
 0x409   :  { %1261 = vxpose.xlu0.c.b16.cont [4/8] (narrow) %v2443_v2, 32  ;;  %1676 = vrcp.f32 %v1169_v19 }
 0x40a   :  { %1678 = vrcp.f32 %v1167_v37 }
 0x40c   :  { %v1171_v36 = vpop.xlane.xlu1 %1170  ;;  %v1165_v58 = vpop.xlane.xlu0 %1164 }
 0x40d   :  { %1262 = vxpose.xlu0.c.b16.cont [5/8] (narrow) %v1243_v51, 32  ;;  %1680 = vrcp.f32 %v1165_v58 }
 0x40e   :  { %1682 = vrcp.f32 %v1171_v36 }
 0x40f   :  { %v1675_v16 = vpop.eup %1674 }
 0x410   :  { %v1179_v41 = vpop.xlane.xlu1 %1178  ;;  %v1247_v15 = vpop.permute.xlu0 %1246  ;;  %v1210_v1 = vmul.f32 %v1675_v16, %v2495_v33 }
 0x411   :  { %1263 = vxpose.xlu0.c.b16.cont [6/8] (narrow) %v1245_v45, 32 }
 0x413   :  { %v1677_v54 = vpop.eup %1676 }
 0x414   :  { %v1679_v38 = vpop.eup %1678  ;;  %v1249_v49 = vpop.permute.xlu1 %1248  ;;  %v1213_v56 = vmul.f32 %v1677_v54, %v2499_v50 }
 0x415   :  { %1264 = vxpose.xlu0.c.b16.cont [7/8] (narrow) %v1247_v15, 32  ;;  %v1212_v31 = vmul.f32 %v1679_v38, %v2493_v8 }
 0x417   :  { %v1681_v52 = vpop.eup %1680  ;;  %v1227_v17 = vpack.c.bf16 %v1213_v56, %v1212_v31 }
 0x418   :  { %v1211_v2 = vmul.f32 %v1681_v52, %v2505_v63  ;;  %v1683_v40 = vpop.eup %1682 }
 0x419   :  { %1265 = vxpose.xlu0.c.b16.end [8/8] (narrow) %v1249_v49, 32  ;;  %v1214_v8 = vmul.f32 %v1683_v40, %v2507_v23 }
 0x41a   :  { %v1226_v30 = vpack.c.bf16 %v1211_v2, %v1210_v1 }
 0x41c   :  { %1524 = vmatprep.subr.bf16.mxu1 %v1226_v30 }
 0x41d   :  { %1525 = vmatpush3.bf16.xpose.msra.mxu1 %v1226_v30 }
 0x41e   :  { %1526 = vmatprep.subr.bf16.mxu1 %v1227_v17 }
 0x425   :  { %1527 = vmatpush3.bf16.xpose.msra.mxu1 %v1227_v17 }
 0x441   :  { %v1177_v9 = vpop.xlane.xlu0 %1176 }
 0x442   :  { %1684 = vrcp.f32 %v1177_v9 }
 0x443   :  { %1686 = vrcp.f32 %v1175_v53 }
 0x445   :  { %v1173_v55 = vpop.xlane.xlu0 %1172  ;;  %v1193_v4 = vpop.xlane.xlu1 %1192 }
 0x446   :  { %1688 = vrcp.f32 %v1173_v55 }
 0x447   :  { %1690 = vrcp.f32 %v1179_v41 }
 0x449   :  { %v1183_v47 = vpop.xlane.xlu0 %1182 }
 0x44c   :  { %v1685_v63 = vpop.eup %1684 }
 0x44d   :  { %v1185_v33 = vpop.xlane.xlu0 %1184  ;;  %v1687_v44 = vpop.eup %1686  ;;  %v1217_v14 = vmul.f32 %v1685_v63, %v2531_v46 }
 0x44e   :  { %v1216_v57 = vmul.f32 %v1687_v44, %v2501_v5 }
 0x450   :  { %v1689_v50 = vpop.eup %1688  ;;  %v1229_v61 = vpack.c.bf16 %v1217_v14, %v1216_v57 }
 0x451   :  { %v1181_v0 = vpop.xlane.xlu0 %1180  ;;  %v1215_v10 = vmul.f32 %v1689_v50, %v2535_v59  ;;  %v1691_v18 = vpop.eup %1690 }
 0x452   :  { %1692 = vrcp.f32 %v1181_v0  ;;  %v1218_v23 = vmul.f32 %v1691_v18, %v2511_v13 }
 0x453   :  { %v1228_v39 = vpack.c.bf16 %v1215_v10, %v1214_v8  ;;  %1694 = vrcp.f32 %v1185_v33 }
 0x454   :  { %1696 = vrcp.f32 %v1183_v47 }
 0x455   :  { %v1191_v43 = vpop.xlane.xlu0 %1190  ;;  %1528 = vmatprep.subr.bf16.mxu1 %v1228_v39 }
 0x456   :  { %1529 = vmatpush3.bf16.xpose.msra.mxu1 %v1228_v39 }
 0x457   :  { %1530 = vmatprep.subr.bf16.mxu1 %v1229_v61 }
 0x459   :  { %v1187_v27 = vpop.xlane.xlu0 %1186 }
 0x45c   :  { %v1693_v26 = vpop.eup %1692 }
 0x45d   :  { %v1189_v25 = vpop.xlane.xlu0 %1188  ;;  %v1219_v59 = vmul.f32 %v1693_v26, %v2550_v24  ;;  %v1695_v46 = vpop.eup %1694 }
 0x45e   :  { %1698 = vrcp.f32 %v1189_v25  ;;  %1531 = vmatpush3.bf16.xpose.msra.mxu1 %v1229_v61  ;;  %v1697_v28 = vpop.eup %1696  ;;  %v1221_v62 = vmul.f32 %v1695_v46, %v2547_v32 }
 0x45f   :  { %1700 = vrcp.f32 %v1187_v27  ;;  %v1230_v5 = vpack.c.bf16 %v1219_v59, %v1218_v23  ;;  %v1220_v20 = vmul.f32 %v1697_v28, %v2542_v3 }
 0x460   :  { %1702 = vrcp.f32 %v1191_v43 }
 0x461   :  { %1532 = vmatprep.subr.bf16.mxu1 %v1230_v5  ;;  %v1231_v11 = vpack.c.bf16 %v1221_v62, %v1220_v20  ;;  %1704 = vrcp.f32 %v1193_v4 }
 0x463   :  { %v1266_v7 = vpop.trf.xlu0 }
 0x464   :  { %1540 = vmatprep.mubr.bf16.mxu1 %v1266_v7 }
 0x466   :  { %1533 = vmatpush3.bf16.xpose.msra.mxu1 %v1230_v5 }
 0x467   :  { %1534 = vmatprep.subr.bf16.mxu1 %v1231_v11  ;;  %v1267_v45 = vpop.trf.xlu0 }
 0x468   :  { %v1699_v13 = vpop.eup %1698 }
 0x469   :  { %v1701_v24 = vpop.eup %1700  ;;  %v1223_v34 = vmul.f32 %v1699_v13, %v2563_v42 }
 0x46a   :  { %v1222_v60 = vmul.f32 %v1701_v24, %v2556_v22  ;;  %v1703_v29 = vpop.eup %1702 }
 0x46b   :  { %v1705_v32 = vpop.eup %1704  ;;  %v1224_v48 = vmul.f32 %v1703_v29, %v2553_v21 }
 0x46c   :  { %v1232_v12 = vpack.c.bf16 %v1223_v34, %v1222_v60  ;;  %v1225_v3 = vmul.f32 %v1705_v32, %v2537_v35 }
 0x46e   :  { %1535 = vmatpush3.bf16.xpose.msra.mxu1 %v1231_v11  ;;  %v1233_v51 = vpack.c.bf16 %v1225_v3, %v1224_v48 }
 0x46f   :  { %1536 = vmatprep.subr.bf16.mxu1 %v1232_v12 }
 0x476   :  { %1537 = vmatpush3.bf16.xpose.msra.mxu1 %v1232_v12 }
 0x477   :  { %1538 = vmatprep.subr.bf16.mxu1 %v1233_v51 }
 0x47e   :  { %1539 = vmatpush3.bf16.xpose.msra.mxu1 %v1233_v51 }
 0x485   :  { %1541 = vmatmul.mubr.bf16.vlgmr.msra.gmra.mrb[20].mxu1 %v1267_v45 }
 0x4d2   :  { %v1490_v37 = vpop.f32.mrb[16].mxu1 }
 0x4d3   :  { %887 = vst [vmem:[#allocation2 + $0x10] sm:$0xff] %v1490_v37  ;;  %v870_v42 = vpop.f32.mrb[17].mxu1 }
 0x4d4   :  { %885 = vst [vmem:[#allocation2] sm:$0xff] %v870_v42  ;;  %v1491_v22 = vpop.f32.mrb[18].mxu1 }
 0x4d5   :  { %888 = vst [vmem:[#allocation2 + $0x18] sm:$0xff] %v1491_v22  ;;  %v873_v6 = vpop.f32.mrb[19].mxu1 }
 0x4d6   :  { %886 = vst [vmem:[#allocation2 + $0x8] sm:$0xff] %v873_v6 }
 0x558   :  { %v1542_v53 = vpop.f32.mrb[20].mxu1 }
 0x559   :  { %1326 = vst [vmem:[#allocation2 + $0x30] sm:$0xff] %v1542_v53  ;;  %v1308_v21 = vpop.f32.mrb[21].mxu1 }
 0x55a   :  { %1324 = vst [vmem:[#allocation2 + $0x20] sm:$0xff] %v1308_v21  ;;  %v1543_v35 = vpop.f32.mrb[22].mxu1 }
 0x55b   :  { %1327 = vst [vmem:[#allocation2 + $0x38] sm:$0xff] %v1543_v35  ;;  %v1311_v19 = vpop.f32.mrb[23].mxu1 }
 0x55c   :  { %1325 = vst [vmem:[#allocation2 + $0x28] sm:$0xff] %v1311_v19 }
 0x55d   :  { %1717 = shalt.err (!%p1714_p4)
}
 0x55e   :  { %s1718_s22 = scalar_lea.hbm %s2609_s2, 1024 }
 0x55f   :  { %p1719_p5 = scmp.ne.s32.totalorder %s2609_s2, %s1718_s22  ;;  %p1722_p6 = scmp.lt.u32.totalorder %s1718_s22, %s2609_s2 }
 0x561   :  { %p1724_p7 = pnand %p1722_p6, %p1719_p5 }
 0x563   :  { %1727 = shalt.err (!%p1724_p7)
}
 0x564   :  { %s1734_s27 = smov 128   ;;  %s1735_s28 = smov 8  }
 0x565   :  { %1339 = dma.vmem_to_hbm [thread:$0]  %s1334_s18, 1024, %s2609_s2, [#allocation3], %s1734_s27, %s1734_s27, %s1735_s28  }
 0x566   :  { %1728 = dma.done.wait [#allocation3], 1024  }
 0x567   :  { %1729 = vsyncadd [#allocation3], 4294966272 }
 0x568   :  { %1343 = vsyncpa [#allocation3], 1 }

</bundles_post_ra>
